<compile_context>
chip_gen: v6e
topology: v6e:2x2x1
jax: 0.10.0
libtpu: 0.0.40
codegen_flags: <defaults>
</compile_context>

<pallas_src>
import math

import jax
import jax.numpy as jnp
import numpy as np
from jax.experimental import pallas as pl
from jax.experimental.pallas import tpu as pltpu

LN_EPS = 1e-5  # torch.nn.LayerNorm default


def _make_block_kernel(num_heads: int, head_dim: int, dim: int,
                       hidden: int, mlp_chunk: int, kv_chunk: int):
    """Returns a Pallas kernel closed over static head / dim / chunk constants."""
    bf16 = jnp.bfloat16

    def layernorm(h, w2d, b2d):
        mu = jnp.mean(h, axis=-1, keepdims=True)
        d = h - mu
        var = jnp.mean(d * d, axis=-1, keepdims=True)
        return d * jax.lax.rsqrt(var + LN_EPS) * w2d + b2d

    def gelu_exact(h):
        # torch.nn.GELU default (erf-based, NOT tanh approximation)
        return 0.5 * h * (1.0 + jax.lax.erf(h * (1.0 / math.sqrt(2.0))))

    def kernel(xt_ref, xf_ref, n1w_ref, n1b_ref,
               wq_ref, wk_ref, wv_ref, wproj_ref, bproj_ref,
               n2w_ref, n2b_ref, w1_ref, b1_ref, w2_ref, b2_ref,
               o_ref, k_sc, v_sc):
        qi = pl.program_id(1)
        seq = xf_ref.shape[1]

        n1w = n1w_ref[...]  # (1, C) f32
        n1b = n1b_ref[...]

        # ---- K/V for the full sequence: once per batch element (qi == 0), kept
        # ---- resident in bf16 VMEM scratch across all q row-tiles. Row-chunked
        # ---- so the f32 GEMM temporaries stay bounded (v7x VMEM).
        @pl.when(qi == 0)
        def _():
            for r0 in range(0, seq, kv_chunk):
                xf = xf_ref[0, r0:r0 + kv_chunk, :].astype(jnp.float32)  # bf16 -> f32 stats
                hf = layernorm(xf, n1w, n1b).astype(bf16)
                k_sc[r0:r0 + kv_chunk, :] = jnp.dot(
                    hf, wk_ref[...], preferred_element_type=jnp.float32).astype(bf16)
                v_sc[r0:r0 + kv_chunk, :] = jnp.dot(
                    hf, wv_ref[...], preferred_element_type=jnp.float32).astype(bf16)

        # ---- attention branch (this row tile) --------------------------------
        x = xt_ref[0]                                           # (tq, C) f32
        h = layernorm(x, n1w, n1b).astype(bf16)
        # 1/sqrt(head_dim) already folded into wq at parameter-prep time
        q_all = jnp.dot(h, wq_ref[...], preferred_element_type=jnp.float32)  # (tq, C)

        k_all = k_sc[...]                                       # (N, C) bf16
        v_all = v_sc[...]                                       # (N, C) bf16

        # per-head softmax; head outputs are concatenated (bf16) and fed through a
        # single full-depth (K = C) output-projection GEMM.
        head_outs = []
        for hi in range(num_heads):
            lo = hi * head_dim
            q = q_all[:, lo:lo + head_dim].astype(bf16)          # (tq, hd)
            k = k_all[:, lo:lo + head_dim]                       # (N, hd)
            v = v_all[:, lo:lo + head_dim]                       # (N, hd)
            # contract last dims of q and k directly (no transpose materialized)
            s = jax.lax.dot_general(q, k, (((1,), (1,)), ((), ())),
                                    preferred_element_type=jnp.float32)  # (tq, N)
            s = s - jnp.max(s, axis=-1, keepdims=True)
            p = jnp.exp(s)
            p = p * pl.reciprocal(jnp.sum(p, axis=-1, keepdims=True), approx=True)
            hv = jnp.dot(p.astype(bf16), v,
                         preferred_element_type=jnp.float32)     # (tq, hd)
            head_outs.append(hv.astype(bf16))

        attn = head_outs[0] if num_heads == 1 else jnp.concatenate(head_outs, axis=-1)
        x = x + jnp.dot(attn, wproj_ref[...],
                        preferred_element_type=jnp.float32) + bproj_ref[...]

        # ---- mlp branch: hidden axis chunked so GELU(chunk i) overlaps the GEMMs
        # ---- of neighbouring chunks instead of idling the MXU --------------------
        h2 = layernorm(x, n2w_ref[...], n2b_ref[...]).astype(bf16)
        mlp = None
        for c0 in range(0, hidden, mlp_chunk):
            t = jnp.dot(h2, w1_ref[:, c0:c0 + mlp_chunk],
                        preferred_element_type=jnp.float32)
            t = gelu_exact(t + b1_ref[:, c0:c0 + mlp_chunk])
            part = jnp.dot(t.astype(bf16), w2_ref[c0:c0 + mlp_chunk, :],
                           preferred_element_type=jnp.float32)
            mlp = part if mlp is None else mlp + part

        o_ref[0] = x + mlp + b2_ref[...]

    return kernel


# ------------------------------ sizing heuristics -------------------------------
def _divisor_chunk(n, prefs):
    for c in prefs:
        if n % c == 0:
            return c
    return n


def _estimate_vmem_bytes(N, C, hidden, tq, mlp_chunk, kv_chunk, *,
                         full_x_bufs, weight_bufs):
    w_bytes = (4 * C * C + 2 * C * hidden) * 2 * weight_bufs        # bf16 weights
    small_bytes = (6 * C + hidden) * 4 * 2                          # ln/bias vectors
    act_bytes = (2 * tq * C * 4              # x row tile (double-buffered, f32)
                 + full_x_bufs * N * C * 2   # full-sequence x (bf16)
                 + 2 * N * C * 2             # K/V bf16 scratch
                 + 2 * tq * C * 4            # output tile (double-buffered, f32)
                 + tq * (8 * C + 2 * N + mlp_chunk) * 4   # per-step temporaries
                 + kv_chunk * C * 6)         # K/V-compute temporaries (qi == 0)
    return w_bytes + small_bytes + act_bytes


def _pick_tq(N, C, hidden, mlp_chunk, kv_chunk, vmem_cap):
    if vmem_cap <= 64 * 1024 * 1024:          # v7x-class: 64 MiB VMEM per core
        prefs = (256, 128) if N * C * 4 <= (4 << 20) else (128, 256)
    else:                                     # v5e/v6e: 128 MiB VMEM
        prefs = (512, 256, 128)
    budget = int(0.70 * vmem_cap)
    for t in prefs:
        if N % t == 0 and _estimate_vmem_bytes(
                N, C, hidden, t, mlp_chunk, kv_chunk,
                full_x_bufs=1, weight_bufs=1) <= budget:
            return t
    for t in (256, 128):
        if N % t == 0:
            return t
    return N


# ------------------------------ parameter prep ---------------------------------
def prepare_block_params(params, *, num_heads):
    """One-time prep: slice qkv, fold 1/sqrt(head_dim) into Wq (f32, pre-cast),
    cast all large weights to bf16. Call once and reuse across forward calls."""
    C = params["w_qkv"].shape[0]
    head_dim = C // num_heads
    scale = 1.0 / math.sqrt(head_dim)
    bf16 = jnp.bfloat16
    return {
        "n1_w": params["n1_w"], "n1_b": params["n1_b"],
        "wq": (params["w_qkv"][:, :C] * scale).astype(bf16),
        "wk": params["w_qkv"][:, C:2 * C].astype(bf16),
        "wv": params["w_qkv"][:, 2 * C:].astype(bf16),
        "wproj": params["w_proj"].astype(bf16),
        "b_proj": params["b_proj"],
        "n2_w": params["n2_w"], "n2_b": params["n2_b"],
        "w_fc1": params["w_fc1"].astype(bf16),
        "b_fc1": params["b_fc1"],
        "w_fc2": params["w_fc2"].astype(bf16),
        "b_fc2": params["b_fc2"],
    }


# --------------------------------- wrapper --------------------------------------
def block_forward(x, prepared, *, num_heads, single_buffer_constants=True):
    """x: (B, N, C) float32. prepared: output of prepare_block_params."""
    B, N, C = x.shape
    head_dim = C // num_heads
    hidden = prepared["w_fc1"].shape[1]

    mlp_chunk = 512 if (hidden % 512 == 0 and hidden > 512) else hidden
    kv_chunk = _divisor_chunk(N, (1024, 512, 256, 128))

    try:
        vmem_cap = int(pltpu.get_tpu_info().vmem_capacity_bytes)
    except Exception:
        vmem_cap = 128 * 1024 * 1024

    tq = _pick_tq(N, C, hidden, mlp_chunk, kv_chunk, vmem_cap)
    nq = N // tq

    kernel = _make_block_kernel(num_heads, head_dim, C, hidden, mlp_chunk, kv_chunk)

    # K/V-path copy of x in bf16: halves the duplicated HBM read and the VMEM block.
    x_full = x.astype(jnp.bfloat16)

    const_mode = pl.Buffered(1) if single_buffer_constants else None

    def const_spec(shape, index_map):   # constant / per-batch blocks -> single-buffered
        if const_mode is None:
            return pl.BlockSpec(shape, index_map)
        return pl.BlockSpec(shape, index_map, pipeline_mode=const_mode)

    wmap = lambda b, qi: (0, 0)
    xfmap = lambda b, qi: (b, 0, 0)

    def vspec(shape):                   # small per-channel vectors
        return pl.BlockSpec(shape, wmap)

    n_bufs = 1 if single_buffer_constants else 2
    est = _estimate_vmem_bytes(N, C, hidden, tq, mlp_chunk, kv_chunk,
                               full_x_bufs=n_bufs, weight_bufs=n_bufs)
    vmem_limit = int(max(32 * 1024 * 1024,
                         min(est + (4 << 20), int(0.85 * vmem_cap))))

    grid_spec = pltpu.PrefetchScalarGridSpec(
        num_scalar_prefetch=0,
        grid=(B, nq),
        in_specs=[
            pl.BlockSpec((1, tq, C), lambda b, qi: (b, qi, 0)),   # x row tile (f32)
            const_spec((1, N, C), xfmap),                         # full-seq x (bf16)
            vspec((1, C)), vspec((1, C)),                         # norm1 w/b
            const_spec((C, C), wmap), const_spec((C, C), wmap),   # Wq, Wk
            const_spec((C, C), wmap),                             # Wv
            const_spec((C, C), wmap),                             # Wproj
            vspec((1, C)),                                        # proj bias
            vspec((1, C)), vspec((1, C)),                         # norm2 w/b
            const_spec((C, hidden), wmap), vspec((1, hidden)),    # fc1 w/b
            const_spec((hidden, C), wmap), vspec((1, C)),         # fc2 w/b
        ],
        out_specs=pl.BlockSpec((1, tq, C), lambda b, qi: (b, qi, 0)),
        scratch_shapes=[pltpu.VMEM((N, C), jnp.bfloat16),         # K scratch
                        pltpu.VMEM((N, C), jnp.bfloat16)],        # V scratch
    )

    # TODO(synk): on v7x with B == 1 the 'parallel' batch axis cannot fill both
    # TensorCores; a two-phase grid over (B, 2*nq) with qi parallel (or per-core
    # K/V recompute) would recover that case and also remove the qi==0 bubble.
    return pl.pallas_call(
        kernel,
        out_shape=jax.ShapeDtypeStruct((B, N, C), jnp.float32),
        grid_spec=grid_spec,
        compiler_params=pltpu.CompilerParams(
            dimension_semantics=("parallel", "arbitrary"),
            vmem_limit_bytes=vmem_limit),
    )(x, x_full,
      prepared["n1_w"], prepared["n1_b"],
      prepared["wq"], prepared["wk"], prepared["wv"],
      prepared["wproj"], prepared["b_proj"],
      prepared["n2_w"], prepared["n2_b"],
      prepared["w_fc1"], prepared["b_fc1"],
      prepared["w_fc2"], prepared["b_fc2"])


# ----------------------------- pure-JAX reference ------------------------------
def block_reference(x, params, *, num_heads):
    B, N, C = x.shape
    hd = C // num_heads

    def ln(h, w, b):
        mu = jnp.mean(h, axis=-1, keepdims=True)
        var = jnp.mean((h - mu) ** 2, axis=-1, keepdims=True)
        return (h - mu) / jnp.sqrt(var + LN_EPS) * w[0] + b[0]

    h = ln(x, params["n1_w"], params["n1_b"])
    qkv = h @ params["w_qkv"]                                # (B, N, 3C)
    q, k, v = jnp.split(qkv, 3, axis=-1)

    def heads(t):  # (B, N, C) -> (B, H, N, hd)
        return t.reshape(B, N, num_heads, hd).transpose(0, 2, 1, 3)

    q, k, v = heads(q), heads(k), heads(v)
    s = jnp.einsum("bhqd,bhkd->bhqk", q, k) / math.sqrt(hd)
    p = jax.nn.softmax(s, axis=-1)
    a = jnp.einsum("bhqk,bhkd->bhqd", p, v).transpose(0, 2, 1, 3).reshape(B, N, C)
    a = a @ params["w_proj"] + params["b_proj"][0]
    x = x + a

    h2 = ln(x, params["n2_w"], params["n2_b"])
    h2 = h2 @ params["w_fc1"] + params["b_fc1"][0]
    h2 = 0.5 * h2 * (1.0 + jax.lax.erf(h2 / math.sqrt(2.0)))
    h2 = h2 @ params["w_fc2"] + params["b_fc2"][0]
    return x + h2


# ---------------------------------- main ---------------------------------------
if __name__ == "__main__":
    B, N, C = 2, 8, 32
    num_heads = 4
    mlp_ratio = 4.0
    hidden = int(C * mlp_ratio)

    key = jax.random.PRNGKey(0)
    keys = jax.random.split(key, 8)

    def rnd(k, shape, s=0.02):
        return (jax.random.normal(k, shape, dtype=jnp.float32) * s).astype(jnp.float32)

    params = {
        "n1_w": jnp.ones((1, C), jnp.float32),
        "n1_b": jnp.zeros((1, C), jnp.float32),
        "w_qkv": rnd(keys[0], (C, 3 * C)),          # (in, out) layout, [q|k|v] cols
        "w_proj": rnd(keys[1], (C, C)),
        "b_proj": rnd(keys[2], (1, C)),
        "n2_w": jnp.ones((1, C), jnp.float32),
        "n2_b": jnp.zeros((1, C), jnp.float32),
        "w_fc1": rnd(keys[3], (C, hidden)),
        "b_fc1": rnd(keys[4], (1, hidden)),
        "w_fc2": rnd(keys[5], (hidden, C)),
        "b_fc2": rnd(keys[6], (1, C)),
    }

    x = jax.random.normal(keys[7], (B, N, C), dtype=jnp.float32)

    prepared = prepare_block_params(params, num_heads=num_heads)

    try:
        out = block_forward(x, prepared, num_heads=num_heads,
                            single_buffer_constants=True)
    except Exception:
        # fallback if pl.Buffered(1) is not accepted by this jax/Mosaic version
        out = block_forward(x, prepared, num_heads=num_heads,
                            single_buffer_constants=False)
    out = jax.block_until_ready(out)

    # reference with bf16-rounded weights (kernel uses bf16 weights, f32 accumulation)
    ref_params = dict(params)
    for wname in ("w_qkv", "w_proj", "w_fc1", "w_fc2"):
        ref_params[wname] = params[wname].astype(jnp.bfloat16).astype(jnp.float32)
    ref = block_reference(x, ref_params, num_heads=num_heads)

    np.testing.assert_allclose(np.asarray(out), np.asarray(ref), rtol=1e-2, atol=1e-2)

    print("KERNEL_OK")
</pallas_src>

<mosaic_0001>
module attributes {stable_mosaic.version = 11 : i64} {
  func.func @kernel(%arg0: i32, %arg1: i32, %arg2: memref<1x8x32xf32, #tpu.memory_space<vmem>>, %arg3: memref<1x8x32xbf16, #tpu.memory_space<vmem>>, %arg4: memref<1x32xf32, #tpu.memory_space<vmem>>, %arg5: memref<1x32xf32, #tpu.memory_space<vmem>>, %arg6: memref<32x32xbf16, #tpu.memory_space<vmem>>, %arg7: memref<32x32xbf16, #tpu.memory_space<vmem>>, %arg8: memref<32x32xbf16, #tpu.memory_space<vmem>>, %arg9: memref<32x32xbf16, #tpu.memory_space<vmem>>, %arg10: memref<1x32xf32, #tpu.memory_space<vmem>>, %arg11: memref<1x32xf32, #tpu.memory_space<vmem>>, %arg12: memref<1x32xf32, #tpu.memory_space<vmem>>, %arg13: memref<32x128xbf16, #tpu.memory_space<vmem>>, %arg14: memref<1x128xf32, #tpu.memory_space<vmem>>, %arg15: memref<128x32xbf16, #tpu.memory_space<vmem>>, %arg16: memref<1x32xf32, #tpu.memory_space<vmem>>, %arg17: memref<1x8x32xf32, #tpu.memory_space<vmem>>, %arg18: memref<8x32xbf16, #tpu.memory_space<vmem>>, %arg19: memref<8x32xbf16, #tpu.memory_space<vmem>>) attributes {dimension_semantics = [#tpu.dimension_semantics<parallel>, #tpu.dimension_semantics<arbitrary>], iteration_bounds = array<i64: 2, 1>, scalar_prefetch = 0 : i64, scratch_operands = 2 : i64, tpu.core_type = #tpu.core_type<tc>, window_params = [{transform_indices = @transform_0, window_bounds = array<i64: 1, 8, 32>}, {pipeline_mode = #tpu.pipeline_mode<synchronous>, transform_indices = @transform_1, window_bounds = array<i64: 1, 8, 32>}, {pipeline_mode = #tpu.pipeline_mode<synchronous>, transform_indices = @transform_2, window_bounds = array<i64: 1, 32>}, {pipeline_mode = #tpu.pipeline_mode<synchronous>, transform_indices = @transform_3, window_bounds = array<i64: 1, 32>}, {pipeline_mode = #tpu.pipeline_mode<synchronous>, transform_indices = @transform_4, window_bounds = array<i64: 32, 32>}, {pipeline_mode = #tpu.pipeline_mode<synchronous>, transform_indices = @transform_5, window_bounds = array<i64: 32, 32>}, {pipeline_mode = #tpu.pipeline_mode<synchronous>, transform_indices = @transform_6, window_bounds = array<i64: 32, 32>}, {pipeline_mode = #tpu.pipeline_mode<synchronous>, transform_indices = @transform_7, window_bounds = array<i64: 32, 32>}, {pipeline_mode = #tpu.pipeline_mode<synchronous>, transform_indices = @transform_8, window_bounds = array<i64: 1, 32>}, {pipeline_mode = #tpu.pipeline_mode<synchronous>, transform_indices = @transform_9, window_bounds = array<i64: 1, 32>}, {pipeline_mode = #tpu.pipeline_mode<synchronous>, transform_indices = @transform_10, window_bounds = array<i64: 1, 32>}, {pipeline_mode = #tpu.pipeline_mode<synchronous>, transform_indices = @transform_11, window_bounds = array<i64: 32, 128>}, {pipeline_mode = #tpu.pipeline_mode<synchronous>, transform_indices = @transform_12, window_bounds = array<i64: 1, 128>}, {pipeline_mode = #tpu.pipeline_mode<synchronous>, transform_indices = @transform_13, window_bounds = array<i64: 128, 32>}, {pipeline_mode = #tpu.pipeline_mode<synchronous>, transform_indices = @transform_14, window_bounds = array<i64: 1, 32>}, {transform_indices = @transform_15, window_bounds = array<i64: 1, 8, 32>}]} {
    %c0 = arith.constant 0 : index
    %c0_0 = arith.constant 0 : index
    %0 = vector.load %arg4[%c0, %c0_0] : memref<1x32xf32, #tpu.memory_space<vmem>>, vector<1x32xf32>
    %c0_1 = arith.constant 0 : index
    %c0_2 = arith.constant 0 : index
    %1 = vector.load %arg5[%c0_1, %c0_2] : memref<1x32xf32, #tpu.memory_space<vmem>>, vector<1x32xf32>
    %c0_i32 = arith.constant 0 : i32
    %2 = arith.cmpi eq, %arg1, %c0_i32 : i32
    %3 = arith.extui %2 : i1 to i32
    %c0_i32_3 = arith.constant 0 : i32
    %4 = arith.cmpi ne, %3, %c0_i32_3 : i32
    scf.if %4 {
      %c0_64 = arith.constant 0 : index
      %c0_65 = arith.constant 0 : index
      %c0_66 = arith.constant 0 : index
      %157 = vector.load %arg3[%c0_64, %c0_65, %c0_66] : memref<1x8x32xbf16, #tpu.memory_space<vmem>>, vector<1x8x32xbf16>
      %158 = vector.shape_cast %157 : vector<1x8x32xbf16> to vector<8x32xbf16>
      %159 = arith.extf %158 : vector<8x32xbf16> to vector<8x32xf32>
      %cst_67 = arith.constant dense<0.000000e+00> : vector<8xf32>
      %160 = vector.multi_reduction <add>, %159, %cst_67 [1] : vector<8x32xf32> to vector<8xf32>
      %161 = vector.shape_cast %160 : vector<8xf32> to vector<8x1xf32>
      %cst_68 = arith.constant 3.200000e+01 : f32
      %162 = vector.broadcast %cst_68 : f32 to vector<8x1xf32>
      %163 = arith.divf %161, %162 : vector<8x1xf32>
      %164 = vector.broadcast %163 : vector<8x1xf32> to vector<8x32xf32>
      %165 = arith.subf %159, %164 : vector<8x32xf32>
      %166 = arith.mulf %165, %165 : vector<8x32xf32>
      %cst_69 = arith.constant dense<0.000000e+00> : vector<8xf32>
      %167 = vector.multi_reduction <add>, %166, %cst_69 [1] : vector<8x32xf32> to vector<8xf32>
      %168 = vector.shape_cast %167 : vector<8xf32> to vector<8x1xf32>
      %cst_70 = arith.constant 3.200000e+01 : f32
      %169 = vector.broadcast %cst_70 : f32 to vector<8x1xf32>
      %170 = arith.divf %168, %169 : vector<8x1xf32>
      %cst_71 = arith.constant 9.99999974E-6 : f32
      %171 = vector.broadcast %cst_71 : f32 to vector<8x1xf32>
      %172 = arith.addf %170, %171 : vector<8x1xf32>
      %173 = math.rsqrt %172 : vector<8x1xf32>
      %174 = vector.broadcast %173 : vector<8x1xf32> to vector<8x32xf32>
      %175 = arith.mulf %165, %174 : vector<8x32xf32>
      %176 = vector.broadcast %0 : vector<1x32xf32> to vector<8x32xf32>
      %177 = arith.mulf %175, %176 : vector<8x32xf32>
      %178 = vector.broadcast %1 : vector<1x32xf32> to vector<8x32xf32>
      %179 = arith.addf %177, %178 : vector<8x32xf32>
      %180 = arith.truncf %179 : vector<8x32xf32> to vector<8x32xbf16>
      %c0_72 = arith.constant 0 : index
      %c0_73 = arith.constant 0 : index
      %181 = vector.load %arg7[%c0_72, %c0_73] : memref<32x32xbf16, #tpu.memory_space<vmem>>, vector<32x32xbf16>
      %cst_74 = arith.constant dense<0.000000e+00> : vector<8x32xf32>
      %182 = tpu.matmul %180, %181, %cst_74 {dimension_numbers = #tpu.dot_dimension_numbers<[1], [0], [0], [1], [0, 0, 1, 1], [], []>} : vector<8x32xbf16>, vector<32x32xbf16>, vector<8x32xf32> -> vector<8x32xf32>
      %183 = arith.truncf %182 : vector<8x32xf32> to vector<8x32xbf16>
      %c0_75 = arith.constant 0 : index
      %c0_76 = arith.constant 0 : index
      %184 = vector.load %arg18[%c0_75, %c0_76] : memref<8x32xbf16, #tpu.memory_space<vmem>>, vector<8x32xbf16>
      tpu.vector_store %arg18[%c0_75, %c0_76], %183 {strides = array<i32>} : memref<8x32xbf16, #tpu.memory_space<vmem>>, vector<8x32xbf16>,
      %c0_77 = arith.constant 0 : index
      %c0_78 = arith.constant 0 : index
      %185 = vector.load %arg8[%c0_77, %c0_78] : memref<32x32xbf16, #tpu.memory_space<vmem>>, vector<32x32xbf16>
      %cst_79 = arith.constant dense<0.000000e+00> : vector<8x32xf32>
      %186 = tpu.matmul %180, %185, %cst_79 {dimension_numbers = #tpu.dot_dimension_numbers<[1], [0], [0], [1], [0, 0, 1, 1], [], []>} : vector<8x32xbf16>, vector<32x32xbf16>, vector<8x32xf32> -> vector<8x32xf32>
      %187 = arith.truncf %186 : vector<8x32xf32> to vector<8x32xbf16>
      %c0_80 = arith.constant 0 : index
      %c0_81 = arith.constant 0 : index
      %188 = vector.load %arg19[%c0_80, %c0_81] : memref<8x32xbf16, #tpu.memory_space<vmem>>, vector<8x32xbf16>
      tpu.vector_store %arg19[%c0_80, %c0_81], %187 {strides = array<i32>} : memref<8x32xbf16, #tpu.memory_space<vmem>>, vector<8x32xbf16>,
    } else {
    }
    %c0_4 = arith.constant 0 : index
    %c0_5 = arith.constant 0 : index
    %c0_6 = arith.constant 0 : index
    %5 = vector.load %arg2[%c0_4, %c0_5, %c0_6] : memref<1x8x32xf32, #tpu.memory_space<vmem>>, vector<1x8x32xf32>
    %6 = vector.shape_cast %5 : vector<1x8x32xf32> to vector<8x32xf32>
    %cst = arith.constant dense<0.000000e+00> : vector<8xf32>
    %7 = vector.multi_reduction <add>, %6, %cst [1] : vector<8x32xf32> to vector<8xf32>
    %8 = vector.shape_cast %7 : vector<8xf32> to vector<8x1xf32>
    %cst_7 = arith.constant 3.200000e+01 : f32
    %9 = vector.broadcast %cst_7 : f32 to vector<8x1xf32>
    %10 = arith.divf %8, %9 : vector<8x1xf32>
    %11 = vector.broadcast %10 : vector<8x1xf32> to vector<8x32xf32>
    %12 = arith.subf %6, %11 : vector<8x32xf32>
    %13 = arith.mulf %12, %12 : vector<8x32xf32>
    %cst_8 = arith.constant dense<0.000000e+00> : vector<8xf32>
    %14 = vector.multi_reduction <add>, %13, %cst_8 [1] : vector<8x32xf32> to vector<8xf32>
    %15 = vector.shape_cast %14 : vector<8xf32> to vector<8x1xf32>
    %cst_9 = arith.constant 3.200000e+01 : f32
    %16 = vector.broadcast %cst_9 : f32 to vector<8x1xf32>
    %17 = arith.divf %15, %16 : vector<8x1xf32>
    %cst_10 = arith.constant 9.99999974E-6 : f32
    %18 = vector.broadcast %cst_10 : f32 to vector<8x1xf32>
    %19 = arith.addf %17, %18 : vector<8x1xf32>
    %20 = math.rsqrt %19 : vector<8x1xf32>
    %21 = vector.broadcast %20 : vector<8x1xf32> to vector<8x32xf32>
    %22 = arith.mulf %12, %21 : vector<8x32xf32>
    %23 = vector.broadcast %0 : vector<1x32xf32> to vector<8x32xf32>
    %24 = arith.mulf %22, %23 : vector<8x32xf32>
    %25 = vector.broadcast %1 : vector<1x32xf32> to vector<8x32xf32>
    %26 = arith.addf %24, %25 : vector<8x32xf32>
    %27 = arith.truncf %26 : vector<8x32xf32> to vector<8x32xbf16>
    %c0_11 = arith.constant 0 : index
    %c0_12 = arith.constant 0 : index
    %28 = vector.load %arg6[%c0_11, %c0_12] : memref<32x32xbf16, #tpu.memory_space<vmem>>, vector<32x32xbf16>
    %cst_13 = arith.constant dense<0.000000e+00> : vector<8x32xf32>
    %29 = tpu.matmul %27, %28, %cst_13 {dimension_numbers = #tpu.dot_dimension_numbers<[1], [0], [0], [1], [0, 0, 1, 1], [], []>} : vector<8x32xbf16>, vector<32x32xbf16>, vector<8x32xf32> -> vector<8x32xf32>
    %c0_14 = arith.constant 0 : index
    %c0_15 = arith.constant 0 : index
    %30 = vector.load %arg18[%c0_14, %c0_15] : memref<8x32xbf16, #tpu.memory_space<vmem>>, vector<8x32xbf16>
    %c0_16 = arith.constant 0 : index
    %c0_17 = arith.constant 0 : index
    %31 = vector.load %arg19[%c0_16, %c0_17] : memref<8x32xbf16, #tpu.memory_space<vmem>>, vector<8x32xbf16>
    %32 = vector.extract_strided_slice %29 {offsets = [0, 0], sizes = [8, 8], strides = [1, 1]} : vector<8x32xf32> to vector<8x8xf32>
    %33 = arith.truncf %32 : vector<8x8xf32> to vector<8x8xbf16>
    %34 = vector.extract_strided_slice %30 {offsets = [0, 0], sizes = [8, 8], strides = [1, 1]} : vector<8x32xbf16> to vector<8x8xbf16>
    %35 = vector.extract_strided_slice %31 {offsets = [0, 0], sizes = [8, 8], strides = [1, 1]} : vector<8x32xbf16> to vector<8x8xbf16>
    %cst_18 = arith.constant dense<0.000000e+00> : vector<8x8xf32>
    %36 = tpu.matmul %33, %34, %cst_18 {dimension_numbers = #tpu.dot_dimension_numbers<[1], [1], [0], [0], [0, 0, 1, 0], [], []>} : vector<8x8xbf16>, vector<8x8xbf16>, vector<8x8xf32> -> vector<8x8xf32>
    %cst_19 = arith.constant dense<0xFF800000> : vector<8xf32>
    %37 = vector.multi_reduction <maximumf>, %36, %cst_19 [1] : vector<8x8xf32> to vector<8xf32>
    %38 = vector.shape_cast %37 : vector<8xf32> to vector<8x1xf32>
    %39 = vector.broadcast %38 : vector<8x1xf32> to vector<8x8xf32>
    %40 = arith.subf %36, %39 : vector<8x8xf32>
    %41 = math.exp %40 : vector<8x8xf32>
    %cst_20 = arith.constant dense<0.000000e+00> : vector<8xf32>
    %42 = vector.multi_reduction <add>, %41, %cst_20 [1] : vector<8x8xf32> to vector<8xf32>
    %43 = vector.shape_cast %42 : vector<8xf32> to vector<8x1xf32>
    %44 = tpu.reciprocal %43 {approx = true} : vector<8x1xf32> -> vector<8x1xf32>
    %45 = vector.broadcast %44 : vector<8x1xf32> to vector<8x8xf32>
    %46 = arith.mulf %41, %45 : vector<8x8xf32>
    %47 = arith.truncf %46 : vector<8x8xf32> to vector<8x8xbf16>
    %cst_21 = arith.constant dense<0.000000e+00> : vector<8x8xf32>
    %48 = tpu.matmul %47, %35, %cst_21 {dimension_numbers = #tpu.dot_dimension_numbers<[1], [0], [0], [1], [0, 0, 1, 1], [], []>} : vector<8x8xbf16>, vector<8x8xbf16>, vector<8x8xf32> -> vector<8x8xf32>
    %49 = arith.truncf %48 : vector<8x8xf32> to vector<8x8xbf16>
    %50 = vector.extract_strided_slice %29 {offsets = [0, 8], sizes = [8, 8], strides = [1, 1]} : vector<8x32xf32> to vector<8x8xf32>
    %51 = arith.truncf %50 : vector<8x8xf32> to vector<8x8xbf16>
    %52 = vector.extract_strided_slice %30 {offsets = [0, 8], sizes = [8, 8], strides = [1, 1]} : vector<8x32xbf16> to vector<8x8xbf16>
    %53 = vector.extract_strided_slice %31 {offsets = [0, 8], sizes = [8, 8], strides = [1, 1]} : vector<8x32xbf16> to vector<8x8xbf16>
    %cst_22 = arith.constant dense<0.000000e+00> : vector<8x8xf32>
    %54 = tpu.matmul %51, %52, %cst_22 {dimension_numbers = #tpu.dot_dimension_numbers<[1], [1], [0], [0], [0, 0, 1, 0], [], []>} : vector<8x8xbf16>, vector<8x8xbf16>, vector<8x8xf32> -> vector<8x8xf32>
    %cst_23 = arith.constant dense<0xFF800000> : vector<8xf32>
    %55 = vector.multi_reduction <maximumf>, %54, %cst_23 [1] : vector<8x8xf32> to vector<8xf32>
    %56 = vector.shape_cast %55 : vector<8xf32> to vector<8x1xf32>
    %57 = vector.broadcast %56 : vector<8x1xf32> to vector<8x8xf32>
    %58 = arith.subf %54, %57 : vector<8x8xf32>
    %59 = math.exp %58 : vector<8x8xf32>
    %cst_24 = arith.constant dense<0.000000e+00> : vector<8xf32>
    %60 = vector.multi_reduction <add>, %59, %cst_24 [1] : vector<8x8xf32> to vector<8xf32>
    %61 = vector.shape_cast %60 : vector<8xf32> to vector<8x1xf32>
    %62 = tpu.reciprocal %61 {approx = true} : vector<8x1xf32> -> vector<8x1xf32>
    %63 = vector.broadcast %62 : vector<8x1xf32> to vector<8x8xf32>
    %64 = arith.mulf %59, %63 : vector<8x8xf32>
    %65 = arith.truncf %64 : vector<8x8xf32> to vector<8x8xbf16>
    %cst_25 = arith.constant dense<0.000000e+00> : vector<8x8xf32>
    %66 = tpu.matmul %65, %53, %cst_25 {dimension_numbers = #tpu.dot_dimension_numbers<[1], [0], [0], [1], [0, 0, 1, 1], [], []>} : vector<8x8xbf16>, vector<8x8xbf16>, vector<8x8xf32> -> vector<8x8xf32>
    %67 = arith.truncf %66 : vector<8x8xf32> to vector<8x8xbf16>
    %68 = vector.extract_strided_slice %29 {offsets = [0, 16], sizes = [8, 8], strides = [1, 1]} : vector<8x32xf32> to vector<8x8xf32>
    %69 = arith.truncf %68 : vector<8x8xf32> to vector<8x8xbf16>
    %70 = vector.extract_strided_slice %30 {offsets = [0, 16], sizes = [8, 8], strides = [1, 1]} : vector<8x32xbf16> to vector<8x8xbf16>
    %71 = vector.extract_strided_slice %31 {offsets = [0, 16], sizes = [8, 8], strides = [1, 1]} : vector<8x32xbf16> to vector<8x8xbf16>
    %cst_26 = arith.constant dense<0.000000e+00> : vector<8x8xf32>
    %72 = tpu.matmul %69, %70, %cst_26 {dimension_numbers = #tpu.dot_dimension_numbers<[1], [1], [0], [0], [0, 0, 1, 0], [], []>} : vector<8x8xbf16>, vector<8x8xbf16>, vector<8x8xf32> -> vector<8x8xf32>
    %cst_27 = arith.constant dense<0xFF800000> : vector<8xf32>
    %73 = vector.multi_reduction <maximumf>, %72, %cst_27 [1] : vector<8x8xf32> to vector<8xf32>
    %74 = vector.shape_cast %73 : vector<8xf32> to vector<8x1xf32>
    %75 = vector.broadcast %74 : vector<8x1xf32> to vector<8x8xf32>
    %76 = arith.subf %72, %75 : vector<8x8xf32>
    %77 = math.exp %76 : vector<8x8xf32>
    %cst_28 = arith.constant dense<0.000000e+00> : vector<8xf32>
    %78 = vector.multi_reduction <add>, %77, %cst_28 [1] : vector<8x8xf32> to vector<8xf32>
    %79 = vector.shape_cast %78 : vector<8xf32> to vector<8x1xf32>
    %80 = tpu.reciprocal %79 {approx = true} : vector<8x1xf32> -> vector<8x1xf32>
    %81 = vector.broadcast %80 : vector<8x1xf32> to vector<8x8xf32>
    %82 = arith.mulf %77, %81 : vector<8x8xf32>
    %83 = arith.truncf %82 : vector<8x8xf32> to vector<8x8xbf16>
    %cst_29 = arith.constant dense<0.000000e+00> : vector<8x8xf32>
    %84 = tpu.matmul %83, %71, %cst_29 {dimension_numbers = #tpu.dot_dimension_numbers<[1], [0], [0], [1], [0, 0, 1, 1], [], []>} : vector<8x8xbf16>, vector<8x8xbf16>, vector<8x8xf32> -> vector<8x8xf32>
    %85 = arith.truncf %84 : vector<8x8xf32> to vector<8x8xbf16>
    %86 = vector.extract_strided_slice %29 {offsets = [0, 24], sizes = [8, 8], strides = [1, 1]} : vector<8x32xf32> to vector<8x8xf32>
    %87 = arith.truncf %86 : vector<8x8xf32> to vector<8x8xbf16>
    %88 = vector.extract_strided_slice %30 {offsets = [0, 24], sizes = [8, 8], strides = [1, 1]} : vector<8x32xbf16> to vector<8x8xbf16>
    %89 = vector.extract_strided_slice %31 {offsets = [0, 24], sizes = [8, 8], strides = [1, 1]} : vector<8x32xbf16> to vector<8x8xbf16>
    %cst_30 = arith.constant dense<0.000000e+00> : vector<8x8xf32>
    %90 = tpu.matmul %87, %88, %cst_30 {dimension_numbers = #tpu.dot_dimension_numbers<[1], [1], [0], [0], [0, 0, 1, 0], [], []>} : vector<8x8xbf16>, vector<8x8xbf16>, vector<8x8xf32> -> vector<8x8xf32>
    %cst_31 = arith.constant dense<0xFF800000> : vector<8xf32>
    %91 = vector.multi_reduction <maximumf>, %90, %cst_31 [1] : vector<8x8xf32> to vector<8xf32>
    %92 = vector.shape_cast %91 : vector<8xf32> to vector<8x1xf32>
    %93 = vector.broadcast %92 : vector<8x1xf32> to vector<8x8xf32>
    %94 = arith.subf %90, %93 : vector<8x8xf32>
    %95 = math.exp %94 : vector<8x8xf32>
    %cst_32 = arith.constant dense<0.000000e+00> : vector<8xf32>
    %96 = vector.multi_reduction <add>, %95, %cst_32 [1] : vector<8x8xf32> to vector<8xf32>
    %97 = vector.shape_cast %96 : vector<8xf32> to vector<8x1xf32>
    %98 = tpu.reciprocal %97 {approx = true} : vector<8x1xf32> -> vector<8x1xf32>
    %99 = vector.broadcast %98 : vector<8x1xf32> to vector<8x8xf32>
    %100 = arith.mulf %95, %99 : vector<8x8xf32>
    %101 = arith.truncf %100 : vector<8x8xf32> to vector<8x8xbf16>
    %cst_33 = arith.constant dense<0.000000e+00> : vector<8x8xf32>
    %102 = tpu.matmul %101, %89, %cst_33 {dimension_numbers = #tpu.dot_dimension_numbers<[1], [0], [0], [1], [0, 0, 1, 1], [], []>} : vector<8x8xbf16>, vector<8x8xbf16>, vector<8x8xf32> -> vector<8x8xf32>
    %103 = arith.truncf %102 : vector<8x8xf32> to vector<8x8xbf16>
    %104 = tpu.concatenate %49, %67, %85, %103 in 1 : vector<8x8xbf16>, vector<8x8xbf16>, vector<8x8xbf16>, vector<8x8xbf16> -> vector<8x32xbf16>
    %c0_34 = arith.constant 0 : index
    %c0_35 = arith.constant 0 : index
    %105 = vector.load %arg9[%c0_34, %c0_35] : memref<32x32xbf16, #tpu.memory_space<vmem>>, vector<32x32xbf16>
    %cst_36 = arith.constant dense<0.000000e+00> : vector<8x32xf32>
    %106 = tpu.matmul %104, %105, %cst_36 {dimension_numbers = #tpu.dot_dimension_numbers<[1], [0], [0], [1], [0, 0, 1, 1], [], []>} : vector<8x32xbf16>, vector<32x32xbf16>, vector<8x32xf32> -> vector<8x32xf32>
    %107 = arith.addf %6, %106 : vector<8x32xf32>
    %c0_37 = arith.constant 0 : index
    %c0_38 = arith.constant 0 : index
    %108 = vector.load %arg10[%c0_37, %c0_38] : memref<1x32xf32, #tpu.memory_space<vmem>>, vector<1x32xf32>
    %109 = vector.broadcast %108 : vector<1x32xf32> to vector<8x32xf32>
    %110 = arith.addf %107, %109 : vector<8x32xf32>
    %c0_39 = arith.constant 0 : index
    %c0_40 = arith.constant 0 : index
    %111 = vector.load %arg11[%c0_39, %c0_40] : memref<1x32xf32, #tpu.memory_space<vmem>>, vector<1x32xf32>
    %c0_41 = arith.constant 0 : index
    %c0_42 = arith.constant 0 : index
    %112 = vector.load %arg12[%c0_41, %c0_42] : memref<1x32xf32, #tpu.memory_space<vmem>>, vector<1x32xf32>
    %cst_43 = arith.constant dense<0.000000e+00> : vector<8xf32>
    %113 = vector.multi_reduction <add>, %110, %cst_43 [1] : vector<8x32xf32> to vector<8xf32>
    %114 = vector.shape_cast %113 : vector<8xf32> to vector<8x1xf32>
    %cst_44 = arith.constant 3.200000e+01 : f32
    %115 = vector.broadcast %cst_44 : f32 to vector<8x1xf32>
    %116 = arith.divf %114, %115 : vector<8x1xf32>
    %117 = vector.broadcast %116 : vector<8x1xf32> to vector<8x32xf32>
    %118 = arith.subf %110, %117 : vector<8x32xf32>
    %119 = arith.mulf %118, %118 : vector<8x32xf32>
    %cst_45 = arith.constant dense<0.000000e+00> : vector<8xf32>
    %120 = vector.multi_reduction <add>, %119, %cst_45 [1] : vector<8x32xf32> to vector<8xf32>
    %121 = vector.shape_cast %120 : vector<8xf32> to vector<8x1xf32>
    %cst_46 = arith.constant 3.200000e+01 : f32
    %122 = vector.broadcast %cst_46 : f32 to vector<8x1xf32>
    %123 = arith.divf %121, %122 : vector<8x1xf32>
    %cst_47 = arith.constant 9.99999974E-6 : f32
    %124 = vector.broadcast %cst_47 : f32 to vector<8x1xf32>
    %125 = arith.addf %123, %124 : vector<8x1xf32>
    %126 = math.rsqrt %125 : vector<8x1xf32>
    %127 = vector.broadcast %126 : vector<8x1xf32> to vector<8x32xf32>
    %128 = arith.mulf %118, %127 : vector<8x32xf32>
    %129 = vector.broadcast %111 : vector<1x32xf32> to vector<8x32xf32>
    %130 = arith.mulf %128, %129 : vector<8x32xf32>
    %131 = vector.broadcast %112 : vector<1x32xf32> to vector<8x32xf32>
    %132 = arith.addf %130, %131 : vector<8x32xf32>
    %133 = arith.truncf %132 : vector<8x32xf32> to vector<8x32xbf16>
    %c0_48 = arith.constant 0 : index
    %c0_49 = arith.constant 0 : index
    %134 = vector.load %arg13[%c0_48, %c0_49] : memref<32x128xbf16, #tpu.memory_space<vmem>>, vector<32x128xbf16>
    %cst_50 = arith.constant dense<0.000000e+00> : vector<8x128xf32>
    %135 = tpu.matmul %133, %134, %cst_50 {dimension_numbers = #tpu.dot_dimension_numbers<[1], [0], [0], [1], [0, 0, 1, 1], [], []>} : vector<8x32xbf16>, vector<32x128xbf16>, vector<8x128xf32> -> vector<8x128xf32>
    %c0_51 = arith.constant 0 : index
    %c0_52 = arith.constant 0 : index
    %136 = vector.load %arg14[%c0_51, %c0_52] : memref<1x128xf32, #tpu.memory_space<vmem>>, vector<1x128xf32>
    %137 = vector.broadcast %136 : vector<1x128xf32> to vector<8x128xf32>
    %138 = arith.addf %135, %137 : vector<8x128xf32>
    %cst_53 = arith.constant 5.000000e-01 : f32
    %139 = vector.broadcast %cst_53 : f32 to vector<8x128xf32>
    %140 = arith.mulf %139, %138 : vector<8x128xf32>
    %cst_54 = arith.constant 0.707106769 : f32
    %141 = vector.broadcast %cst_54 : f32 to vector<8x128xf32>
    %142 = arith.mulf %138, %141 : vector<8x128xf32>
    %143 = math.erf %142 : vector<8x128xf32>
    %cst_55 = arith.constant 1.000000e+00 : f32
    %144 = vector.broadcast %cst_55 : f32 to vector<8x128xf32>
    %145 = arith.addf %144, %143 : vector<8x128xf32>
    %146 = arith.mulf %140, %145 : vector<8x128xf32>
    %147 = arith.truncf %146 : vector<8x128xf32> to vector<8x128xbf16>
    %c0_56 = arith.constant 0 : index
    %c0_57 = arith.constant 0 : index
    %148 = vector.load %arg15[%c0_56, %c0_57] : memref<128x32xbf16, #tpu.memory_space<vmem>>, vector<128x32xbf16>
    %cst_58 = arith.constant dense<0.000000e+00> : vector<8x32xf32>
    %149 = tpu.matmul %147, %148, %cst_58 {dimension_numbers = #tpu.dot_dimension_numbers<[1], [0], [0], [1], [0, 0, 1, 1], [], []>} : vector<8x128xbf16>, vector<128x32xbf16>, vector<8x32xf32> -> vector<8x32xf32>
    %150 = arith.addf %110, %149 : vector<8x32xf32>
    %c0_59 = arith.constant 0 : index
    %c0_60 = arith.constant 0 : index
    %151 = vector.load %arg16[%c0_59, %c0_60] : memref<1x32xf32, #tpu.memory_space<vmem>>, vector<1x32xf32>
    %152 = vector.broadcast %151 : vector<1x32xf32> to vector<8x32xf32>
    %153 = arith.addf %150, %152 : vector<8x32xf32>
    %c0_61 = arith.constant 0 : index
    %c0_62 = arith.constant 0 : index
    %c0_63 = arith.constant 0 : index
    %154 = vector.load %arg17[%c0_61, %c0_62, %c0_63] : memref<1x8x32xf32, #tpu.memory_space<vmem>>, vector<1x8x32xf32>
    %155 = vector.shape_cast %154 : vector<1x8x32xf32> to vector<8x32xf32>
    %156 = vector.shape_cast %153 : vector<8x32xf32> to vector<1x8x32xf32>
    tpu.vector_store %arg17[%c0_61, %c0_62, %c0_63], %156 {strides = array<i32>} : memref<1x8x32xf32, #tpu.memory_space<vmem>>, vector<1x8x32xf32>,
    return
  }
  func.func @transform_0(%arg0: i32, %arg1: i32) -> (i32, i32, i32) {
    %c0_i32 = arith.constant 0 : i32
    %c0_i32_0 = arith.constant 0 : i32
    return %arg0, %arg1, %c0_i32 : i32, i32, i32
  }
  func.func @transform_1(%arg0: i32, %arg1: i32) -> (i32, i32, i32) {
    %c0_i32 = arith.constant 0 : i32
    %c0_i32_0 = arith.constant 0 : i32
    %c0_i32_1 = arith.constant 0 : i32
    return %arg0, %c0_i32, %c0_i32_0 : i32, i32, i32
  }
  func.func @transform_2(%arg0: i32, %arg1: i32) -> (i32, i32) {
    %c0_i32 = arith.constant 0 : i32
    %c0_i32_0 = arith.constant 0 : i32
    %c0_i32_1 = arith.constant 0 : i32
    return %c0_i32, %c0_i32_0 : i32, i32
  }
  func.func @transform_3(%arg0: i32, %arg1: i32) -> (i32, i32) {
    %c0_i32 = arith.constant 0 : i32
    %c0_i32_0 = arith.constant 0 : i32
    %c0_i32_1 = arith.constant 0 : i32
    return %c0_i32, %c0_i32_0 : i32, i32
  }
  func.func @transform_4(%arg0: i32, %arg1: i32) -> (i32, i32) {
    %c0_i32 = arith.constant 0 : i32
    %c0_i32_0 = arith.constant 0 : i32
    %c0_i32_1 = arith.constant 0 : i32
    return %c0_i32, %c0_i32_0 : i32, i32
  }
  func.func @transform_5(%arg0: i32, %arg1: i32) -> (i32, i32) {
    %c0_i32 = arith.constant 0 : i32
    %c0_i32_0 = arith.constant 0 : i32
    %c0_i32_1 = arith.constant 0 : i32
    return %c0_i32, %c0_i32_0 : i32, i32
  }
  func.func @transform_6(%arg0: i32, %arg1: i32) -> (i32, i32) {
    %c0_i32 = arith.constant 0 : i32
    %c0_i32_0 = arith.constant 0 : i32
    %c0_i32_1 = arith.constant 0 : i32
    return %c0_i32, %c0_i32_0 : i32, i32
  }
  func.func @transform_7(%arg0: i32, %arg1: i32) -> (i32, i32) {
    %c0_i32 = arith.constant 0 : i32
    %c0_i32_0 = arith.constant 0 : i32
    %c0_i32_1 = arith.constant 0 : i32
    return %c0_i32, %c0_i32_0 : i32, i32
  }
  func.func @transform_8(%arg0: i32, %arg1: i32) -> (i32, i32) {
    %c0_i32 = arith.constant 0 : i32
    %c0_i32_0 = arith.constant 0 : i32
    %c0_i32_1 = arith.constant 0 : i32
    return %c0_i32, %c0_i32_0 : i32, i32
  }
  func.func @transform_9(%arg0: i32, %arg1: i32) -> (i32, i32) {
    %c0_i32 = arith.constant 0 : i32
    %c0_i32_0 = arith.constant 0 : i32
    %c0_i32_1 = arith.constant 0 : i32
    return %c0_i32, %c0_i32_0 : i32, i32
  }
  func.func @transform_10(%arg0: i32, %arg1: i32) -> (i32, i32) {
    %c0_i32 = arith.constant 0 : i32
    %c0_i32_0 = arith.constant 0 : i32
    %c0_i32_1 = arith.constant 0 : i32
    return %c0_i32, %c0_i32_0 : i32, i32
  }
  func.func @transform_11(%arg0: i32, %arg1: i32) -> (i32, i32) {
    %c0_i32 = arith.constant 0 : i32
    %c0_i32_0 = arith.constant 0 : i32
    %c0_i32_1 = arith.constant 0 : i32
    return %c0_i32, %c0_i32_0 : i32, i32
  }
  func.func @transform_12(%arg0: i32, %arg1: i32) -> (i32, i32) {
    %c0_i32 = arith.constant 0 : i32
    %c0_i32_0 = arith.constant 0 : i32
    %c0_i32_1 = arith.constant 0 : i32
    return %c0_i32, %c0_i32_0 : i32, i32
  }
  func.func @transform_13(%arg0: i32, %arg1: i32) -> (i32, i32) {
    %c0_i32 = arith.constant 0 : i32
    %c0_i32_0 = arith.constant 0 : i32
    %c0_i32_1 = arith.constant 0 : i32
    return %c0_i32, %c0_i32_0 : i32, i32
  }
  func.func @transform_14(%arg0: i32, %arg1: i32) -> (i32, i32) {
    %c0_i32 = arith.constant 0 : i32
    %c0_i32_0 = arith.constant 0 : i32
    %c0_i32_1 = arith.constant 0 : i32
    return %c0_i32, %c0_i32_0 : i32, i32
  }
  func.func @transform_15(%arg0: i32, %arg1: i32) -> (i32, i32, i32) {
    %c0_i32 = arith.constant 0 : i32
    %c0_i32_0 = arith.constant 0 : i32
    return %arg0, %arg1, %c0_i32 : i32, i32, i32
  }
}

module attributes {stable_mosaic.version = 11 : i64} {
  func.func @kernel(%arg0: i32, %arg1: i32, %arg2: memref<1x8x32xf32, #tpu.memory_space<vmem>>, %arg3: memref<1x8x32xbf16, #tpu.memory_space<vmem>>, %arg4: memref<1x32xf32, #tpu.memory_space<vmem>>, %arg5: memref<1x32xf32, #tpu.memory_space<vmem>>, %arg6: memref<32x32xbf16, #tpu.memory_space<vmem>>, %arg7: memref<32x32xbf16, #tpu.memory_space<vmem>>, %arg8: memref<32x32xbf16, #tpu.memory_space<vmem>>, %arg9: memref<32x32xbf16, #tpu.memory_space<vmem>>, %arg10: memref<1x32xf32, #tpu.memory_space<vmem>>, %arg11: memref<1x32xf32, #tpu.memory_space<vmem>>, %arg12: memref<1x32xf32, #tpu.memory_space<vmem>>, %arg13: memref<32x128xbf16, #tpu.memory_space<vmem>>, %arg14: memref<1x128xf32, #tpu.memory_space<vmem>>, %arg15: memref<128x32xbf16, #tpu.memory_space<vmem>>, %arg16: memref<1x32xf32, #tpu.memory_space<vmem>>, %arg17: memref<1x8x32xf32, #tpu.memory_space<vmem>>, %arg18: memref<8x32xbf16, #tpu.memory_space<vmem>>, %arg19: memref<8x32xbf16, #tpu.memory_space<vmem>>) attributes {dimension_semantics = [#tpu.dimension_semantics<parallel>, #tpu.dimension_semantics<arbitrary>], iteration_bounds = array<i64: 2, 1>, scalar_prefetch = 0 : i64, scratch_operands = 2 : i64, tpu.core_type = #tpu.core_type<tc>, window_params = [{transform_indices = @transform_0, window_bounds = array<i64: 1, 8, 32>}, {transform_indices = @transform_1, window_bounds = array<i64: 1, 8, 32>}, {pipeline_mode = #tpu.pipeline_mode<synchronous>, transform_indices = @transform_2, window_bounds = array<i64: 1, 32>}, {pipeline_mode = #tpu.pipeline_mode<synchronous>, transform_indices = @transform_3, window_bounds = array<i64: 1, 32>}, {pipeline_mode = #tpu.pipeline_mode<synchronous>, transform_indices = @transform_4, window_bounds = array<i64: 32, 32>}, {pipeline_mode = #tpu.pipeline_mode<synchronous>, transform_indices = @transform_5, window_bounds = array<i64: 32, 32>}, {pipeline_mode = #tpu.pipeline_mode<synchronous>, transform_indices = @transform_6, window_bounds = array<i64: 32, 32>}, {pipeline_mode = #tpu.pipeline_mode<synchronous>, transform_indices = @transform_7, window_bounds = array<i64: 32, 32>}, {pipeline_mode = #tpu.pipeline_mode<synchronous>, transform_indices = @transform_8, window_bounds = array<i64: 1, 32>}, {pipeline_mode = #tpu.pipeline_mode<synchronous>, transform_indices = @transform_9, window_bounds = array<i64: 1, 32>}, {pipeline_mode = #tpu.pipeline_mode<synchronous>, transform_indices = @transform_10, window_bounds = array<i64: 1, 32>}, {pipeline_mode = #tpu.pipeline_mode<synchronous>, transform_indices = @transform_11, window_bounds = array<i64: 32, 128>}, {pipeline_mode = #tpu.pipeline_mode<synchronous>, transform_indices = @transform_12, window_bounds = array<i64: 1, 128>}, {pipeline_mode = #tpu.pipeline_mode<synchronous>, transform_indices = @transform_13, window_bounds = array<i64: 128, 32>}, {pipeline_mode = #tpu.pipeline_mode<synchronous>, transform_indices = @transform_14, window_bounds = array<i64: 1, 32>}, {transform_indices = @transform_15, window_bounds = array<i64: 1, 8, 32>}]} {
    %c0 = arith.constant 0 : index
    %c0_0 = arith.constant 0 : index
    %0 = vector.load %arg4[%c0, %c0_0] : memref<1x32xf32, #tpu.memory_space<vmem>>, vector<1x32xf32>
    %c0_1 = arith.constant 0 : index
    %c0_2 = arith.constant 0 : index
    %1 = vector.load %arg5[%c0_1, %c0_2] : memref<1x32xf32, #tpu.memory_space<vmem>>, vector<1x32xf32>
    %c0_i32 = arith.constant 0 : i32
    %2 = arith.cmpi eq, %arg1, %c0_i32 : i32
    %3 = arith.extui %2 : i1 to i32
    %c0_i32_3 = arith.constant 0 : i32
    %4 = arith.cmpi ne, %3, %c0_i32_3 : i32
    scf.if %4 {
      %c0_64 = arith.constant 0 : index
      %c0_65 = arith.constant 0 : index
      %c0_66 = arith.constant 0 : index
      %157 = vector.load %arg3[%c0_64, %c0_65, %c0_66] : memref<1x8x32xbf16, #tpu.memory_space<vmem>>, vector<1x8x32xbf16>
      %158 = vector.shape_cast %157 : vector<1x8x32xbf16> to vector<8x32xbf16>
      %159 = arith.extf %158 : vector<8x32xbf16> to vector<8x32xf32>
      %cst_67 = arith.constant dense<0.000000e+00> : vector<8xf32>
      %160 = vector.multi_reduction <add>, %159, %cst_67 [1] : vector<8x32xf32> to vector<8xf32>
      %161 = vector.shape_cast %160 : vector<8xf32> to vector<8x1xf32>
      %cst_68 = arith.constant 3.200000e+01 : f32
      %162 = vector.broadcast %cst_68 : f32 to vector<8x1xf32>
      %163 = arith.divf %161, %162 : vector<8x1xf32>
      %164 = vector.broadcast %163 : vector<8x1xf32> to vector<8x32xf32>
      %165 = arith.subf %159, %164 : vector<8x32xf32>
      %166 = arith.mulf %165, %165 : vector<8x32xf32>
      %cst_69 = arith.constant dense<0.000000e+00> : vector<8xf32>
      %167 = vector.multi_reduction <add>, %166, %cst_69 [1] : vector<8x32xf32> to vector<8xf32>
      %168 = vector.shape_cast %167 : vector<8xf32> to vector<8x1xf32>
      %cst_70 = arith.constant 3.200000e+01 : f32
      %169 = vector.broadcast %cst_70 : f32 to vector<8x1xf32>
      %170 = arith.divf %168, %169 : vector<8x1xf32>
      %cst_71 = arith.constant 9.99999974E-6 : f32
      %171 = vector.broadcast %cst_71 : f32 to vector<8x1xf32>
      %172 = arith.addf %170, %171 : vector<8x1xf32>
      %173 = math.rsqrt %172 : vector<8x1xf32>
      %174 = vector.broadcast %173 : vector<8x1xf32> to vector<8x32xf32>
      %175 = arith.mulf %165, %174 : vector<8x32xf32>
      %176 = vector.broadcast %0 : vector<1x32xf32> to vector<8x32xf32>
      %177 = arith.mulf %175, %176 : vector<8x32xf32>
      %178 = vector.broadcast %1 : vector<1x32xf32> to vector<8x32xf32>
      %179 = arith.addf %177, %178 : vector<8x32xf32>
      %180 = arith.truncf %179 : vector<8x32xf32> to vector<8x32xbf16>
      %c0_72 = arith.constant 0 : index
      %c0_73 = arith.constant 0 : index
      %181 = vector.load %arg7[%c0_72, %c0_73] : memref<32x32xbf16, #tpu.memory_space<vmem>>, vector<32x32xbf16>
      %cst_74 = arith.constant dense<0.000000e+00> : vector<8x32xf32>
      %182 = tpu.matmul %180, %181, %cst_74 {dimension_numbers = #tpu.dot_dimension_numbers<[1], [0], [0], [1], [0, 0, 1, 1], [], []>} : vector<8x32xbf16>, vector<32x32xbf16>, vector<8x32xf32> -> vector<8x32xf32>
      %183 = arith.truncf %182 : vector<8x32xf32> to vector<8x32xbf16>
      %c0_75 = arith.constant 0 : index
      %c0_76 = arith.constant 0 : index
      %184 = vector.load %arg18[%c0_75, %c0_76] : memref<8x32xbf16, #tpu.memory_space<vmem>>, vector<8x32xbf16>
      tpu.vector_store %arg18[%c0_75, %c0_76], %183 {strides = array<i32>} : memref<8x32xbf16, #tpu.memory_space<vmem>>, vector<8x32xbf16>,
      %c0_77 = arith.constant 0 : index
      %c0_78 = arith.constant 0 : index
      %185 = vector.load %arg8[%c0_77, %c0_78] : memref<32x32xbf16, #tpu.memory_space<vmem>>, vector<32x32xbf16>
      %cst_79 = arith.constant dense<0.000000e+00> : vector<8x32xf32>
      %186 = tpu.matmul %180, %185, %cst_79 {dimension_numbers = #tpu.dot_dimension_numbers<[1], [0], [0], [1], [0, 0, 1, 1], [], []>} : vector<8x32xbf16>, vector<32x32xbf16>, vector<8x32xf32> -> vector<8x32xf32>
      %187 = arith.truncf %186 : vector<8x32xf32> to vector<8x32xbf16>
      %c0_80 = arith.constant 0 : index
      %c0_81 = arith.constant 0 : index
      %188 = vector.load %arg19[%c0_80, %c0_81] : memref<8x32xbf16, #tpu.memory_space<vmem>>, vector<8x32xbf16>
      tpu.vector_store %arg19[%c0_80, %c0_81], %187 {strides = array<i32>} : memref<8x32xbf16, #tpu.memory_space<vmem>>, vector<8x32xbf16>,
    } else {
    }
    %c0_4 = arith.constant 0 : index
    %c0_5 = arith.constant 0 : index
    %c0_6 = arith.constant 0 : index
    %5 = vector.load %arg2[%c0_4, %c0_5, %c0_6] : memref<1x8x32xf32, #tpu.memory_space<vmem>>, vector<1x8x32xf32>
    %6 = vector.shape_cast %5 : vector<1x8x32xf32> to vector<8x32xf32>
    %cst = arith.constant dense<0.000000e+00> : vector<8xf32>
    %7 = vector.multi_reduction <add>, %6, %cst [1] : vector<8x32xf32> to vector<8xf32>
    %8 = vector.shape_cast %7 : vector<8xf32> to vector<8x1xf32>
    %cst_7 = arith.constant 3.200000e+01 : f32
    %9 = vector.broadcast %cst_7 : f32 to vector<8x1xf32>
    %10 = arith.divf %8, %9 : vector<8x1xf32>
    %11 = vector.broadcast %10 : vector<8x1xf32> to vector<8x32xf32>
    %12 = arith.subf %6, %11 : vector<8x32xf32>
    %13 = arith.mulf %12, %12 : vector<8x32xf32>
    %cst_8 = arith.constant dense<0.000000e+00> : vector<8xf32>
    %14 = vector.multi_reduction <add>, %13, %cst_8 [1] : vector<8x32xf32> to vector<8xf32>
    %15 = vector.shape_cast %14 : vector<8xf32> to vector<8x1xf32>
    %cst_9 = arith.constant 3.200000e+01 : f32
    %16 = vector.broadcast %cst_9 : f32 to vector<8x1xf32>
    %17 = arith.divf %15, %16 : vector<8x1xf32>
    %cst_10 = arith.constant 9.99999974E-6 : f32
    %18 = vector.broadcast %cst_10 : f32 to vector<8x1xf32>
    %19 = arith.addf %17, %18 : vector<8x1xf32>
    %20 = math.rsqrt %19 : vector<8x1xf32>
    %21 = vector.broadcast %20 : vector<8x1xf32> to vector<8x32xf32>
    %22 = arith.mulf %12, %21 : vector<8x32xf32>
    %23 = vector.broadcast %0 : vector<1x32xf32> to vector<8x32xf32>
    %24 = arith.mulf %22, %23 : vector<8x32xf32>
    %25 = vector.broadcast %1 : vector<1x32xf32> to vector<8x32xf32>
    %26 = arith.addf %24, %25 : vector<8x32xf32>
    %27 = arith.truncf %26 : vector<8x32xf32> to vector<8x32xbf16>
    %c0_11 = arith.constant 0 : index
    %c0_12 = arith.constant 0 : index
    %28 = vector.load %arg6[%c0_11, %c0_12] : memref<32x32xbf16, #tpu.memory_space<vmem>>, vector<32x32xbf16>
    %cst_13 = arith.constant dense<0.000000e+00> : vector<8x32xf32>
    %29 = tpu.matmul %27, %28, %cst_13 {dimension_numbers = #tpu.dot_dimension_numbers<[1], [0], [0], [1], [0, 0, 1, 1], [], []>} : vector<8x32xbf16>, vector<32x32xbf16>, vector<8x32xf32> -> vector<8x32xf32>
    %c0_14 = arith.constant 0 : index
    %c0_15 = arith.constant 0 : index
    %30 = vector.load %arg18[%c0_14, %c0_15] : memref<8x32xbf16, #tpu.memory_space<vmem>>, vector<8x32xbf16>
    %c0_16 = arith.constant 0 : index
    %c0_17 = arith.constant 0 : index
    %31 = vector.load %arg19[%c0_16, %c0_17] : memref<8x32xbf16, #tpu.memory_space<vmem>>, vector<8x32xbf16>
    %32 = vector.extract_strided_slice %29 {offsets = [0, 0], sizes = [8, 8], strides = [1, 1]} : vector<8x32xf32> to vector<8x8xf32>
    %33 = arith.truncf %32 : vector<8x8xf32> to vector<8x8xbf16>
    %34 = vector.extract_strided_slice %30 {offsets = [0, 0], sizes = [8, 8], strides = [1, 1]} : vector<8x32xbf16> to vector<8x8xbf16>
    %35 = vector.extract_strided_slice %31 {offsets = [0, 0], sizes = [8, 8], strides = [1, 1]} : vector<8x32xbf16> to vector<8x8xbf16>
    %cst_18 = arith.constant dense<0.000000e+00> : vector<8x8xf32>
    %36 = tpu.matmul %33, %34, %cst_18 {dimension_numbers = #tpu.dot_dimension_numbers<[1], [1], [0], [0], [0, 0, 1, 0], [], []>} : vector<8x8xbf16>, vector<8x8xbf16>, vector<8x8xf32> -> vector<8x8xf32>
    %cst_19 = arith.constant dense<0xFF800000> : vector<8xf32>
    %37 = vector.multi_reduction <maximumf>, %36, %cst_19 [1] : vector<8x8xf32> to vector<8xf32>
    %38 = vector.shape_cast %37 : vector<8xf32> to vector<8x1xf32>
    %39 = vector.broadcast %38 : vector<8x1xf32> to vector<8x8xf32>
    %40 = arith.subf %36, %39 : vector<8x8xf32>
    %41 = math.exp %40 : vector<8x8xf32>
    %cst_20 = arith.constant dense<0.000000e+00> : vector<8xf32>
    %42 = vector.multi_reduction <add>, %41, %cst_20 [1] : vector<8x8xf32> to vector<8xf32>
    %43 = vector.shape_cast %42 : vector<8xf32> to vector<8x1xf32>
    %44 = tpu.reciprocal %43 {approx = true} : vector<8x1xf32> -> vector<8x1xf32>
    %45 = vector.broadcast %44 : vector<8x1xf32> to vector<8x8xf32>
    %46 = arith.mulf %41, %45 : vector<8x8xf32>
    %47 = arith.truncf %46 : vector<8x8xf32> to vector<8x8xbf16>
    %cst_21 = arith.constant dense<0.000000e+00> : vector<8x8xf32>
    %48 = tpu.matmul %47, %35, %cst_21 {dimension_numbers = #tpu.dot_dimension_numbers<[1], [0], [0], [1], [0, 0, 1, 1], [], []>} : vector<8x8xbf16>, vector<8x8xbf16>, vector<8x8xf32> -> vector<8x8xf32>
    %49 = arith.truncf %48 : vector<8x8xf32> to vector<8x8xbf16>
    %50 = vector.extract_strided_slice %29 {offsets = [0, 8], sizes = [8, 8], strides = [1, 1]} : vector<8x32xf32> to vector<8x8xf32>
    %51 = arith.truncf %50 : vector<8x8xf32> to vector<8x8xbf16>
    %52 = vector.extract_strided_slice %30 {offsets = [0, 8], sizes = [8, 8], strides = [1, 1]} : vector<8x32xbf16> to vector<8x8xbf16>
    %53 = vector.extract_strided_slice %31 {offsets = [0, 8], sizes = [8, 8], strides = [1, 1]} : vector<8x32xbf16> to vector<8x8xbf16>
    %cst_22 = arith.constant dense<0.000000e+00> : vector<8x8xf32>
    %54 = tpu.matmul %51, %52, %cst_22 {dimension_numbers = #tpu.dot_dimension_numbers<[1], [1], [0], [0], [0, 0, 1, 0], [], []>} : vector<8x8xbf16>, vector<8x8xbf16>, vector<8x8xf32> -> vector<8x8xf32>
    %cst_23 = arith.constant dense<0xFF800000> : vector<8xf32>
    %55 = vector.multi_reduction <maximumf>, %54, %cst_23 [1] : vector<8x8xf32> to vector<8xf32>
    %56 = vector.shape_cast %55 : vector<8xf32> to vector<8x1xf32>
    %57 = vector.broadcast %56 : vector<8x1xf32> to vector<8x8xf32>
    %58 = arith.subf %54, %57 : vector<8x8xf32>
    %59 = math.exp %58 : vector<8x8xf32>
    %cst_24 = arith.constant dense<0.000000e+00> : vector<8xf32>
    %60 = vector.multi_reduction <add>, %59, %cst_24 [1] : vector<8x8xf32> to vector<8xf32>
    %61 = vector.shape_cast %60 : vector<8xf32> to vector<8x1xf32>
    %62 = tpu.reciprocal %61 {approx = true} : vector<8x1xf32> -> vector<8x1xf32>
    %63 = vector.broadcast %62 : vector<8x1xf32> to vector<8x8xf32>
    %64 = arith.mulf %59, %63 : vector<8x8xf32>
    %65 = arith.truncf %64 : vector<8x8xf32> to vector<8x8xbf16>
    %cst_25 = arith.constant dense<0.000000e+00> : vector<8x8xf32>
    %66 = tpu.matmul %65, %53, %cst_25 {dimension_numbers = #tpu.dot_dimension_numbers<[1], [0], [0], [1], [0, 0, 1, 1], [], []>} : vector<8x8xbf16>, vector<8x8xbf16>, vector<8x8xf32> -> vector<8x8xf32>
    %67 = arith.truncf %66 : vector<8x8xf32> to vector<8x8xbf16>
    %68 = vector.extract_strided_slice %29 {offsets = [0, 16], sizes = [8, 8], strides = [1, 1]} : vector<8x32xf32> to vector<8x8xf32>
    %69 = arith.truncf %68 : vector<8x8xf32> to vector<8x8xbf16>
    %70 = vector.extract_strided_slice %30 {offsets = [0, 16], sizes = [8, 8], strides = [1, 1]} : vector<8x32xbf16> to vector<8x8xbf16>
    %71 = vector.extract_strided_slice %31 {offsets = [0, 16], sizes = [8, 8], strides = [1, 1]} : vector<8x32xbf16> to vector<8x8xbf16>
    %cst_26 = arith.constant dense<0.000000e+00> : vector<8x8xf32>
    %72 = tpu.matmul %69, %70, %cst_26 {dimension_numbers = #tpu.dot_dimension_numbers<[1], [1], [0], [0], [0, 0, 1, 0], [], []>} : vector<8x8xbf16>, vector<8x8xbf16>, vector<8x8xf32> -> vector<8x8xf32>
    %cst_27 = arith.constant dense<0xFF800000> : vector<8xf32>
    %73 = vector.multi_reduction <maximumf>, %72, %cst_27 [1] : vector<8x8xf32> to vector<8xf32>
    %74 = vector.shape_cast %73 : vector<8xf32> to vector<8x1xf32>
    %75 = vector.broadcast %74 : vector<8x1xf32> to vector<8x8xf32>
    %76 = arith.subf %72, %75 : vector<8x8xf32>
    %77 = math.exp %76 : vector<8x8xf32>
    %cst_28 = arith.constant dense<0.000000e+00> : vector<8xf32>
    %78 = vector.multi_reduction <add>, %77, %cst_28 [1] : vector<8x8xf32> to vector<8xf32>
    %79 = vector.shape_cast %78 : vector<8xf32> to vector<8x1xf32>
    %80 = tpu.reciprocal %79 {approx = true} : vector<8x1xf32> -> vector<8x1xf32>
    %81 = vector.broadcast %80 : vector<8x1xf32> to vector<8x8xf32>
    %82 = arith.mulf %77, %81 : vector<8x8xf32>
    %83 = arith.truncf %82 : vector<8x8xf32> to vector<8x8xbf16>
    %cst_29 = arith.constant dense<0.000000e+00> : vector<8x8xf32>
    %84 = tpu.matmul %83, %71, %cst_29 {dimension_numbers = #tpu.dot_dimension_numbers<[1], [0], [0], [1], [0, 0, 1, 1], [], []>} : vector<8x8xbf16>, vector<8x8xbf16>, vector<8x8xf32> -> vector<8x8xf32>
    %85 = arith.truncf %84 : vector<8x8xf32> to vector<8x8xbf16>
    %86 = vector.extract_strided_slice %29 {offsets = [0, 24], sizes = [8, 8], strides = [1, 1]} : vector<8x32xf32> to vector<8x8xf32>
    %87 = arith.truncf %86 : vector<8x8xf32> to vector<8x8xbf16>
    %88 = vector.extract_strided_slice %30 {offsets = [0, 24], sizes = [8, 8], strides = [1, 1]} : vector<8x32xbf16> to vector<8x8xbf16>
    %89 = vector.extract_strided_slice %31 {offsets = [0, 24], sizes = [8, 8], strides = [1, 1]} : vector<8x32xbf16> to vector<8x8xbf16>
    %cst_30 = arith.constant dense<0.000000e+00> : vector<8x8xf32>
    %90 = tpu.matmul %87, %88, %cst_30 {dimension_numbers = #tpu.dot_dimension_numbers<[1], [1], [0], [0], [0, 0, 1, 0], [], []>} : vector<8x8xbf16>, vector<8x8xbf16>, vector<8x8xf32> -> vector<8x8xf32>
    %cst_31 = arith.constant dense<0xFF800000> : vector<8xf32>
    %91 = vector.multi_reduction <maximumf>, %90, %cst_31 [1] : vector<8x8xf32> to vector<8xf32>
    %92 = vector.shape_cast %91 : vector<8xf32> to vector<8x1xf32>
    %93 = vector.broadcast %92 : vector<8x1xf32> to vector<8x8xf32>
    %94 = arith.subf %90, %93 : vector<8x8xf32>
    %95 = math.exp %94 : vector<8x8xf32>
    %cst_32 = arith.constant dense<0.000000e+00> : vector<8xf32>
    %96 = vector.multi_reduction <add>, %95, %cst_32 [1] : vector<8x8xf32> to vector<8xf32>
    %97 = vector.shape_cast %96 : vector<8xf32> to vector<8x1xf32>
    %98 = tpu.reciprocal %97 {approx = true} : vector<8x1xf32> -> vector<8x1xf32>
    %99 = vector.broadcast %98 : vector<8x1xf32> to vector<8x8xf32>
    %100 = arith.mulf %95, %99 : vector<8x8xf32>
    %101 = arith.truncf %100 : vector<8x8xf32> to vector<8x8xbf16>
    %cst_33 = arith.constant dense<0.000000e+00> : vector<8x8xf32>
    %102 = tpu.matmul %101, %89, %cst_33 {dimension_numbers = #tpu.dot_dimension_numbers<[1], [0], [0], [1], [0, 0, 1, 1], [], []>} : vector<8x8xbf16>, vector<8x8xbf16>, vector<8x8xf32> -> vector<8x8xf32>
    %103 = arith.truncf %102 : vector<8x8xf32> to vector<8x8xbf16>
    %104 = tpu.concatenate %49, %67, %85, %103 in 1 : vector<8x8xbf16>, vector<8x8xbf16>, vector<8x8xbf16>, vector<8x8xbf16> -> vector<8x32xbf16>
    %c0_34 = arith.constant 0 : index
    %c0_35 = arith.constant 0 : index
    %105 = vector.load %arg9[%c0_34, %c0_35] : memref<32x32xbf16, #tpu.memory_space<vmem>>, vector<32x32xbf16>
    %cst_36 = arith.constant dense<0.000000e+00> : vector<8x32xf32>
    %106 = tpu.matmul %104, %105, %cst_36 {dimension_numbers = #tpu.dot_dimension_numbers<[1], [0], [0], [1], [0, 0, 1, 1], [], []>} : vector<8x32xbf16>, vector<32x32xbf16>, vector<8x32xf32> -> vector<8x32xf32>
    %107 = arith.addf %6, %106 : vector<8x32xf32>
    %c0_37 = arith.constant 0 : index
    %c0_38 = arith.constant 0 : index
    %108 = vector.load %arg10[%c0_37, %c0_38] : memref<1x32xf32, #tpu.memory_space<vmem>>, vector<1x32xf32>
    %109 = vector.broadcast %108 : vector<1x32xf32> to vector<8x32xf32>
    %110 = arith.addf %107, %109 : vector<8x32xf32>
    %c0_39 = arith.constant 0 : index
    %c0_40 = arith.constant 0 : index
    %111 = vector.load %arg11[%c0_39, %c0_40] : memref<1x32xf32, #tpu.memory_space<vmem>>, vector<1x32xf32>
    %c0_41 = arith.constant 0 : index
    %c0_42 = arith.constant 0 : index
    %112 = vector.load %arg12[%c0_41, %c0_42] : memref<1x32xf32, #tpu.memory_space<vmem>>, vector<1x32xf32>
    %cst_43 = arith.constant dense<0.000000e+00> : vector<8xf32>
    %113 = vector.multi_reduction <add>, %110, %cst_43 [1] : vector<8x32xf32> to vector<8xf32>
    %114 = vector.shape_cast %113 : vector<8xf32> to vector<8x1xf32>
    %cst_44 = arith.constant 3.200000e+01 : f32
    %115 = vector.broadcast %cst_44 : f32 to vector<8x1xf32>
    %116 = arith.divf %114, %115 : vector<8x1xf32>
    %117 = vector.broadcast %116 : vector<8x1xf32> to vector<8x32xf32>
    %118 = arith.subf %110, %117 : vector<8x32xf32>
    %119 = arith.mulf %118, %118 : vector<8x32xf32>
    %cst_45 = arith.constant dense<0.000000e+00> : vector<8xf32>
    %120 = vector.multi_reduction <add>, %119, %cst_45 [1] : vector<8x32xf32> to vector<8xf32>
    %121 = vector.shape_cast %120 : vector<8xf32> to vector<8x1xf32>
    %cst_46 = arith.constant 3.200000e+01 : f32
    %122 = vector.broadcast %cst_46 : f32 to vector<8x1xf32>
    %123 = arith.divf %121, %122 : vector<8x1xf32>
    %cst_47 = arith.constant 9.99999974E-6 : f32
    %124 = vector.broadcast %cst_47 : f32 to vector<8x1xf32>
    %125 = arith.addf %123, %124 : vector<8x1xf32>
    %126 = math.rsqrt %125 : vector<8x1xf32>
    %127 = vector.broadcast %126 : vector<8x1xf32> to vector<8x32xf32>
    %128 = arith.mulf %118, %127 : vector<8x32xf32>
    %129 = vector.broadcast %111 : vector<1x32xf32> to vector<8x32xf32>
    %130 = arith.mulf %128, %129 : vector<8x32xf32>
    %131 = vector.broadcast %112 : vector<1x32xf32> to vector<8x32xf32>
    %132 = arith.addf %130, %131 : vector<8x32xf32>
    %133 = arith.truncf %132 : vector<8x32xf32> to vector<8x32xbf16>
    %c0_48 = arith.constant 0 : index
    %c0_49 = arith.constant 0 : index
    %134 = vector.load %arg13[%c0_48, %c0_49] : memref<32x128xbf16, #tpu.memory_space<vmem>>, vector<32x128xbf16>
    %cst_50 = arith.constant dense<0.000000e+00> : vector<8x128xf32>
    %135 = tpu.matmul %133, %134, %cst_50 {dimension_numbers = #tpu.dot_dimension_numbers<[1], [0], [0], [1], [0, 0, 1, 1], [], []>} : vector<8x32xbf16>, vector<32x128xbf16>, vector<8x128xf32> -> vector<8x128xf32>
    %c0_51 = arith.constant 0 : index
    %c0_52 = arith.constant 0 : index
    %136 = vector.load %arg14[%c0_51, %c0_52] : memref<1x128xf32, #tpu.memory_space<vmem>>, vector<1x128xf32>
    %137 = vector.broadcast %136 : vector<1x128xf32> to vector<8x128xf32>
    %138 = arith.addf %135, %137 : vector<8x128xf32>
    %cst_53 = arith.constant 5.000000e-01 : f32
    %139 = vector.broadcast %cst_53 : f32 to vector<8x128xf32>
    %140 = arith.mulf %139, %138 : vector<8x128xf32>
    %cst_54 = arith.constant 0.707106769 : f32
    %141 = vector.broadcast %cst_54 : f32 to vector<8x128xf32>
    %142 = arith.mulf %138, %141 : vector<8x128xf32>
    %143 = math.erf %142 : vector<8x128xf32>
    %cst_55 = arith.constant 1.000000e+00 : f32
    %144 = vector.broadcast %cst_55 : f32 to vector<8x128xf32>
    %145 = arith.addf %144, %143 : vector<8x128xf32>
    %146 = arith.mulf %140, %145 : vector<8x128xf32>
    %147 = arith.truncf %146 : vector<8x128xf32> to vector<8x128xbf16>
    %c0_56 = arith.constant 0 : index
    %c0_57 = arith.constant 0 : index
    %148 = vector.load %arg15[%c0_56, %c0_57] : memref<128x32xbf16, #tpu.memory_space<vmem>>, vector<128x32xbf16>
    %cst_58 = arith.constant dense<0.000000e+00> : vector<8x32xf32>
    %149 = tpu.matmul %147, %148, %cst_58 {dimension_numbers = #tpu.dot_dimension_numbers<[1], [0], [0], [1], [0, 0, 1, 1], [], []>} : vector<8x128xbf16>, vector<128x32xbf16>, vector<8x32xf32> -> vector<8x32xf32>
    %150 = arith.addf %110, %149 : vector<8x32xf32>
    %c0_59 = arith.constant 0 : index
    %c0_60 = arith.constant 0 : index
    %151 = vector.load %arg16[%c0_59, %c0_60] : memref<1x32xf32, #tpu.memory_space<vmem>>, vector<1x32xf32>
    %152 = vector.broadcast %151 : vector<1x32xf32> to vector<8x32xf32>
    %153 = arith.addf %150, %152 : vector<8x32xf32>
    %c0_61 = arith.constant 0 : index
    %c0_62 = arith.constant 0 : index
    %c0_63 = arith.constant 0 : index
    %154 = vector.load %arg17[%c0_61, %c0_62, %c0_63] : memref<1x8x32xf32, #tpu.memory_space<vmem>>, vector<1x8x32xf32>
    %155 = vector.shape_cast %154 : vector<1x8x32xf32> to vector<8x32xf32>
    %156 = vector.shape_cast %153 : vector<8x32xf32> to vector<1x8x32xf32>
    tpu.vector_store %arg17[%c0_61, %c0_62, %c0_63], %156 {strides = array<i32>} : memref<1x8x32xf32, #tpu.memory_space<vmem>>, vector<1x8x32xf32>,
    return
  }
  func.func @transform_0(%arg0: i32, %arg1: i32) -> (i32, i32, i32) {
    %c0_i32 = arith.constant 0 : i32
    %c0_i32_0 = arith.constant 0 : i32
    return %arg0, %arg1, %c0_i32 : i32, i32, i32
  }
  func.func @transform_1(%arg0: i32, %arg1: i32) -> (i32, i32, i32) {
    %c0_i32 = arith.constant 0 : i32
    %c0_i32_0 = arith.constant 0 : i32
    %c0_i32_1 = arith.constant 0 : i32
    return %arg0, %c0_i32, %c0_i32_0 : i32, i32, i32
  }
  func.func @transform_2(%arg0: i32, %arg1: i32) -> (i32, i32) {
    %c0_i32 = arith.constant 0 : i32
    %c0_i32_0 = arith.constant 0 : i32
    %c0_i32_1 = arith.constant 0 : i32
    return %c0_i32, %c0_i32_0 : i32, i32
  }
  func.func @transform_3(%arg0: i32, %arg1: i32) -> (i32, i32) {
    %c0_i32 = arith.constant 0 : i32
    %c0_i32_0 = arith.constant 0 : i32
    %c0_i32_1 = arith.constant 0 : i32
    return %c0_i32, %c0_i32_0 : i32, i32
  }
  func.func @transform_4(%arg0: i32, %arg1: i32) -> (i32, i32) {
    %c0_i32 = arith.constant 0 : i32
    %c0_i32_0 = arith.constant 0 : i32
    %c0_i32_1 = arith.constant 0 : i32
    return %c0_i32, %c0_i32_0 : i32, i32
  }
  func.func @transform_5(%arg0: i32, %arg1: i32) -> (i32, i32) {
    %c0_i32 = arith.constant 0 : i32
    %c0_i32_0 = arith.constant 0 : i32
    %c0_i32_1 = arith.constant 0 : i32
    return %c0_i32, %c0_i32_0 : i32, i32
  }
  func.func @transform_6(%arg0: i32, %arg1: i32) -> (i32, i32) {
    %c0_i32 = arith.constant 0 : i32
    %c0_i32_0 = arith.constant 0 : i32
    %c0_i32_1 = arith.constant 0 : i32
    return %c0_i32, %c0_i32_0 : i32, i32
  }
  func.func @transform_7(%arg0: i32, %arg1: i32) -> (i32, i32) {
    %c0_i32 = arith.constant 0 : i32
    %c0_i32_0 = arith.constant 0 : i32
    %c0_i32_1 = arith.constant 0 : i32
    return %c0_i32, %c0_i32_0 : i32, i32
  }
  func.func @transform_8(%arg0: i32, %arg1: i32) -> (i32, i32) {
    %c0_i32 = arith.constant 0 : i32
    %c0_i32_0 = arith.constant 0 : i32
    %c0_i32_1 = arith.constant 0 : i32
    return %c0_i32, %c0_i32_0 : i32, i32
  }
  func.func @transform_9(%arg0: i32, %arg1: i32) -> (i32, i32) {
    %c0_i32 = arith.constant 0 : i32
    %c0_i32_0 = arith.constant 0 : i32
    %c0_i32_1 = arith.constant 0 : i32
    return %c0_i32, %c0_i32_0 : i32, i32
  }
  func.func @transform_10(%arg0: i32, %arg1: i32) -> (i32, i32) {
    %c0_i32 = arith.constant 0 : i32
    %c0_i32_0 = arith.constant 0 : i32
    %c0_i32_1 = arith.constant 0 : i32
    return %c0_i32, %c0_i32_0 : i32, i32
  }
  func.func @transform_11(%arg0: i32, %arg1: i32) -> (i32, i32) {
    %c0_i32 = arith.constant 0 : i32
    %c0_i32_0 = arith.constant 0 : i32
    %c0_i32_1 = arith.constant 0 : i32
    return %c0_i32, %c0_i32_0 : i32, i32
  }
  func.func @transform_12(%arg0: i32, %arg1: i32) -> (i32, i32) {
    %c0_i32 = arith.constant 0 : i32
    %c0_i32_0 = arith.constant 0 : i32
    %c0_i32_1 = arith.constant 0 : i32
    return %c0_i32, %c0_i32_0 : i32, i32
  }
  func.func @transform_13(%arg0: i32, %arg1: i32) -> (i32, i32) {
    %c0_i32 = arith.constant 0 : i32
    %c0_i32_0 = arith.constant 0 : i32
    %c0_i32_1 = arith.constant 0 : i32
    return %c0_i32, %c0_i32_0 : i32, i32
  }
  func.func @transform_14(%arg0: i32, %arg1: i32) -> (i32, i32) {
    %c0_i32 = arith.constant 0 : i32
    %c0_i32_0 = arith.constant 0 : i32
    %c0_i32_1 = arith.constant 0 : i32
    return %c0_i32, %c0_i32_0 : i32, i32
  }
  func.func @transform_15(%arg0: i32, %arg1: i32) -> (i32, i32, i32) {
    %c0_i32 = arith.constant 0 : i32
    %c0_i32_0 = arith.constant 0 : i32
    return %arg0, %arg1, %c0_i32 : i32, i32, i32
  }
}

</mosaic_0001>

<bundles_post_ra>
// kernel: tpu_custom_call.1
= control target key start
LH: loop header
LB: loop body
LE: loop exit
PB: predicated region body
PF: predicated region fallthrough
CT: control target
= control target key end

     0   :  { %s2588_s0 = inlined_call_operand.vmem [shape: f32[2,8,32], index: 0, kind: input, shape index: {}]   ;;  %s2589_s1 = inlined_call_operand.hbm [shape: bf16[2,8,32], index: 1, kind: input, shape index: {}]   ;;  %s2590_s2 = inlined_call_operand.vmem [shape: f32[1,32], index: 2, kind: input, shape index: {}]   ;;  %s2591_s3 = inlined_call_operand.vmem [shape: f32[1,32], index: 3, kind: input, shape index: {}]   ;;  %s2592_s4 = inlined_call_operand.vmem [shape: bf16[32,32], index: 4, kind: input, shape index: {}]   ;;  %s2593_s5 = inlined_call_operand.vmem [shape: bf16[32,32], index: 5, kind: input, shape index: {}]   ;;  %s2594_s6 = inlined_call_operand.vmem [shape: bf16[32,32], index: 6, kind: input, shape index: {}]   ;;  %s2595_s7 = inlined_call_operand.vmem [shape: bf16[32,32], index: 7, kind: input, shape index: {}]   ;;  %s2596_s8 = inlined_call_operand.vmem [shape: f32[1,32], index: 8, kind: input, shape index: {}]   ;;  %s2597_s9 = inlined_call_operand.vmem [shape: f32[1,32], index: 9, kind: input, shape index: {}]   ;;  %s2598_s10 = inlined_call_operand.vmem [shape: f32[1,32], index: 10, kind: input, shape index: {}]   ;;  %s2599_s11 = inlined_call_operand.hbm [shape: bf16[32,128], index: 11, kind: input, shape index: {}]   ;;  %s2600_s12 = inlined_call_operand.vmem [shape: f32[1,128], index: 12, kind: input, shape index: {}]   ;;  %s2601_s13 = inlined_call_operand.vmem [shape: bf16[128,32], index: 13, kind: input, shape index: {}]   ;;  %s2602_s14 = inlined_call_operand.vmem [shape: f32[1,32], index: 14, kind: input, shape index: {}]   ;;  %s2603_s15 = inlined_call_operand.hbm [shape: f32[2,8,32], index: 15, kind: output, shape index: {}]  }
   0x1   :  { %2621 = sst [smem:[#allocation21_spill]] %s2602_s14 }
   0x2   :  { %2622 = sst [smem:[#allocation22_spill]] %s2603_s15 }
   0x3   :  { %20 = vsyncpa [#allocation5], 0 }
   0x4   :  { %21 = vsyncpa [#allocation8], 0 }
   0x5   :  { %22 = vsyncpa [#allocation6], 0 }
   0x6   :  { %24 = vsyncpa [#allocation6 + $0x1], 0  ;;  %s2221_s18 = smov 0   ;;  %s2223_s19 = smov 0  }
   0x7   :  { %s2225_s20 = smov 0   ;;  %s2227_s21 = smov 0  }
   0x8   :  { %s2229_s22 = smov 0   ;;  %s2231_s23 = smov 0  }
   0x9 LB: > { %2623 = sst [smem:[#allocation13_spill]] %s2106_s18  ;;  %s1660_s24 = sadd.s32 4294967295, %s2126_s23   ;;  %s2126_s23 = sphi %s2231_s23, %s30_s23   ;;  %s2122_s22 = sphi %s2229_s22, %s2653_s22   ;;  %s2118_s21 = sphi %s2227_s21, %s2652_s21   ;;  %s2114_s20 = sphi %s2225_s20, %s2651_s20   ;;  %s2110_s19 = sphi %s2223_s19, %s2655_s19   ;;  %s2106_s18 = sphi %s2221_s18, %s2654_s18  }
   0xa   : > { %2624 = sst [smem:[#allocation14_spill]] %s2114_s20  ;;  %s1661_s25 = sadd.s32 4294967294, %s2126_s23  }
   0xb   : > { %2625 = sst [smem:[#allocation15_spill]] %s2122_s22  ;;  %s42_s26 = sadd.s32 1, %s2122_s22 }
   0xc   : > { %2626 = sst [smem:[#allocation16_spill]] %s2126_s23  ;;  %p44_p0 = scmp.ge.s32.totalorder %s42_s26, 2 }
   0xd   : > { %s77_s27 = sadd.s32 1, %s2114_s20  ;;  %p90_p1 = scmp.ne.s32.totalorder %s2110_s19, %s2106_s18 }
   0xe   : > { %p388_p2 = scmp.ne.s32.totalorder %s2114_s20, %s2110_s19  ;;  %s2657_s26 = smov (%p44_p0, %s42_s26), 0 }
   0xf   : > { %2627 = sst [smem:[#allocation17_spill]] %s2657_s26  ;;  %p2261_p3 = scmp.eq.s32.totalorder %s1660_s24, 0 }
  0x10   : > { %p389_p4 = scmp.eq.s32.totalorder %s1660_s24, 1  ;;  %s74_s29 = ssub.s32 %s2122_s22, %s2657_s26 }
  0x11   : > { %s2628_s28 = scalar_select %p2261_p3, 1, 0 }
  0x12   : > { %p395_p5 = scmp.eq.s32.totalorder %s1661_s25, 1  ;;  %p75_p6 = scmp.eq.s32.totalorder %s74_s29, 0 }
  0x13   : > { %p2267_p7 = por %p389_p4, %p388_p2  ;;  %p1662_p9 = scmp.ge.s32.totalorder %s2126_s23, 1 }
  0x14   : > { %p2274_p8 = por %p395_p5, %p90_p1  ;;  %p402_p10 = scmp.lt.s32.totalorder %s2126_s23, 3 }
  0x15   : > { %s2629_s30 = scalar_select %p2267_p7, 1, 0 }
  0x16   : > { %s2631_s16 = scalar_select %p2274_p8, 1, 0 }
  0x17   : > { %2630 = sst [smem:[#allocation18_spill]] %s2629_s30  ;;  %s1663_s15 = sshll.u32 %s2118_s21, 6 }
  0x18   : > { %2632 = sst [smem:[#allocation19_spill]] %s2631_s16  ;;  %p2289_p11 = por %p2261_p3, %p90_p1 }
  0x19   : > { %s2280_s17 = scalar_select %p75_p6, %s2114_s20, %s77_s27  }
  0x1a   : > { %s2634_s24 = scalar_select %p2289_p11, 1, 0 }
  0x1b   : > { %2633 = sst [smem:[#allocation20_spill]] %s2280_s17  ;;  %p2293_p12 = pnand %p1662_p9, %p402_p10 }
  0x1c   : > { %s2128_s29 = smov [#allocation4]   ;;  %s415_s27 = scalar_lea.hbm %s2589_s1, %s1663_s15 }
  0x1d   : > { %s2635_s25 = scalar_select %p2293_p12, 1, 0 }
  0x1e   : > { %s417_s26 = sshll.u32 %s2128_s29, 4  ;;  %p1870_p13 = pneg %p2293_p12  ;;  %s418_s26 = int_to_ptr.vmem [resolvable:$true] %s417_s26 }
  0x1f   : > { %s2129_s17 = smov [#allocation7]   ;;  %s1988_s22 = scalar_lea.hbm %s415_s27, 64 }
  0x20   : > { %s454_s20 = sshll.u32 %s2129_s17, 4  ;;  %p2304_p0 = pnand %p1870_p13, %p2289_p11  ;;  %s2308_s20 = int_to_ptr.vmem [resolvable:$true] %s454_s20 }
  0x21   : > { %p2312_p1 = pnand %p1870_p13, %p2261_p3  ;;  %p1989_p2 = scmp.ne.s32.totalorder %s415_s27, %s1988_s22 }
  0x22   : > { %p1990_p4 = pneg %p2304_p0  ;;  %s1993_s17 = scalar_lea.hbm %s2589_s1, 128 }
  0x23   : > { %s2637_s29 = scalar_select %p2312_p1, 1, 0 }
  0x24   : > { %p1991_p5 = pnand %p1990_p4, %p1989_p2  ;;  %p1994_p9 = scmp.lt.s32.totalorder %s415_s27, %s2589_s1 }
  0x25   : > { %p1995_p10 = scmp.lt.s32.totalorder %s1993_s17, %s1988_s22 }
  0x26   : > { %p1992_p6 = pneg %p1991_p5 }
  0x27   : > { %p1996_p8 = por %p1995_p10, %p1994_p9 }
  0x29   : > { %p1997_p13 = pnand %p1996_p8, %p1992_p6 }
  0x2b   : > { %2000 = shalt.err (!%p1997_p13)
}
  0x2c   : > { %s2001_s14 = scalar_lea.vmem %s418_s26, 64  ;;  %p2009_p12 = scmp.lt.s32.totalorder %s418_s26, %s418_s26 }
  0x2d   : > { %p2002_p7 = scmp.ne.s32.totalorder %s418_s26, %s2001_s14  ;;  %p2010_p1 = scmp.lt.s32.totalorder %s2001_s14, %s2001_s14 }
  0x2f   : > { %p2004_p3 = pnand %p2002_p7, %p1990_p4  ;;  %p2011_p2 = por %p2010_p1, %p2009_p12 }
  0x31   : > { %p2005_p11 = pneg %p2004_p3 }
  0x33   : > { %p2012_p5 = pnand %p2011_p2, %p2005_p11 }
  0x35   : > { %2015 = shalt.err (!%p2012_p5)
}
  0x36   : > { %1873 = dma.hbm_to_vmem [thread:$0]  (!%p2304_p0), %s415_s27, 64, %s418_s26, [#allocation5]  }
  0x37   : > { %p2638_p9 = scmp.ne.s32.totalorder %s2637_s29, 0  ;;  %s2027_s23 = scalar_lea.vmem %s2308_s20, 256 }
  0x38   : > { %p2028_p8 = scmp.ne.s32.totalorder %s2308_s20, %s2027_s23  ;;  %p2035_p3 = scmp.lt.s32.totalorder %s2308_s20, %s2308_s20 }
  0x39   : > { %p2018_p10 = pneg %p2638_p9  ;;  %p2036_p7 = scmp.lt.s32.totalorder %s2027_s23, %s2027_s23 }
  0x3b   : > { %p2030_p6 = pnand %p2028_p8, %p2018_p10  ;;  %p2037_p4 = por %p2036_p7, %p2035_p3 }
  0x3d   : > { %p2031_p13 = pneg %p2030_p6 }
  0x3f   : > { %p2038_p12 = pnand %p2037_p4, %p2031_p13 }
  0x41   : > { %2041 = shalt.err (!%p2038_p12)
}
  0x42   : > { %s2130_s14 = smov 64   ;;  %s2131_s18 = smov 4  }
  0x43   : > { %1876 = dma.hbm_to_vmem [thread:$0]  (!%p2638_p9), %s2599_s11, 256, %s2308_s20, [#allocation8], %s2130_s14, %s2130_s14, %s2131_s18  }
  0x44   : > { %p2639_p11 = scmp.ne.s32.totalorder %s2635_s25, 0 }
  0x45   : > { %p2640_p0 = scmp.ne.s32.totalorder (!%p2639_p11), %s2634_s24, 0 }
  0x46   : > { %489 = sbr.rel (%p2639_p11) target bundleno = 2526 (0x9de), region = 80 }
  0x4b   : > { %2093 = dma.done.wait (%p2640_p0), [#allocation5], 64  }
  0x4c   : > { %2095 = vsyncadd (%p2640_p0), [#allocation5], 4294967232  ;;  %p2641_p1 = scmp.ne.s32.totalorder %s2628_s28, 0 }
  0x4e   : > { %2097 = dma.done.wait (%p2641_p1), [#allocation8], 256  }
  0x4f   : > { %2099 = vsyncadd (%p2641_p1), [#allocation8], 4294967040  ;;  %p543_p2 = scmp.lt.s32.totalorder %s2118_s21, 1  ;;  %v557_v0 = vld [vmem:[#allocation4] sm:$0xf]  ;;  %vm559_vm0 = vcmask 261120  }
  0x50   : > { %v558_v2 = vunpack.c.l.bf16 %v557_v0  ;;  %v1944_v15 = vld [vmem:[%s2593_s5 + $0x8] sm:$0xff]   ;;  %v2132_v16 = vmov 0.0   ;;  %vm2133_vm1 = vmmov 0   ;;  %v1945_v17 = vld [vmem:[%s2593_s5] sm:$0xff]   ;;  %vm649_vm2 = vcmask 257024   ;;  %s2134_s24 = smov 120  }
  0x51   : > { %s544_s26 = scalar_select %p543_p2, %s2118_s21, 1  ;;  %1754 = vmatprep.subr.bf16.mxu0 %v2132_v16  ;;  %1758 = vmatprep.mubr.msk.bf16.mxu0 %vm2133_vm1, %v2132_v16  ;;  %v1712_v25 = vld [vmem:[%s2590_s2] ss:$0 sm:$0xff]  ;;  %v1946_v30 = vld [vmem:[%s2594_s6 + $0x8] sm:$0xff]   ;;  %vm802_vm3 = vcmask 64512   ;;  %vm864_vm4 = vcmask 1043456  }
  0x52   : > { %v560_v3 = vsel %vm559_vm0, %v558_v2, 0.0  ;;  %1755 = vmatpush3.bf16.msra.mxu0 %v1944_v15  ;;  %1778 = vmatprep.subr.bf16.mxu1 %v2132_v16  ;;  %v1713_v27 = vld [vmem:[%s2591_s3] ss:$0 sm:$0xff]  ;;  %v1948_v35 = vld [vmem:[%s2592_s4 + $0x8] sm:$0xff]   ;;  %s2135_s15 = smov 104   ;;  %s2136_s16 = smov 112  }
  0x53   : > { %s1669_s20 = sshll.u32 %s544_s26, 3  ;;  %561 = vadd.xlane.f32.xlu0 %v560_v3  ;;  %1756 = vmatprep.subr.bf16.mxu0 %v2132_v16  ;;  %v1947_v33 = vld [vmem:[%s2594_s6] sm:$0xff]   ;;  %s2137_s30 = smov 8   ;;  %vm1261_vm5 = vcmask 130048   ;;  %vm1264_vm6 = vcmask 195584  }
  0x54   : > { %s549_s29 = scalar_lea.vmem %s2588_s0, %s1669_s20  ;;  %1780 = vmatprep.mubr.msk.bf16.mxu1 %vm2133_vm1, %v2132_v16  ;;  %v1949_v37 = vld [vmem:[%s2592_s4] sm:$0xff]   ;;  %s2138_s22 = smov 16  }
  0x55   : > { %v2353_v1 = vld [vmem:[%s549_s29] sm:$0xff]  ;;  %s2139_s26 = smov 24   ;;  %s540_s23 = sand.u32 1, %s2110_s19  }
  0x56   : > { %v711_v4 = vsel %vm559_vm0, %v2353_v1, 0.0  ;;  %1757 = vmatpush3.bf16.msra.mxu0 %v1945_v17  ;;  %s1668_s14 = sshll.u32 %s540_s23, 3  ;;  %s1709_s20 = sshll.u32 %s2118_s21, 7 }
  0x57   : > { %712 = vadd.xlane.f32.xlu0 %v711_v4  ;;  %1762 = vmatprep.subr.bf16.mxu0 %v2132_v16  ;;  %s542_s27 = scalar_lea.vmem [#allocation9], %s1668_s14  ;;  %s1551_s21 = scalar_lea.sflag [#allocation6], %s540_s23 }
  0x58   : > { %s1565_s25 = sshll.u32 %s542_s27, 4  ;;  %s2140_s17 = smov [#allocation9]   ;;  %s2543_s25 = int_to_ptr.vmem [resolvable:$true] %s1565_s25 }
  0x59   : > { %s2046_s14 = sshll.u32 %s2140_s17, 4  ;;  %s2047_s14 = int_to_ptr.vmem [resolvable:$false] %s2046_s14 }
  0x5a   : > { %s2048_s18 = scalar_lea.vmem %s2047_s14, 256  ;;  %p2049_p6 = scmp.lt.s32.totalorder %s2543_s25, %s2047_s14 }
  0xdc   : > { %v562_v5 = vpop.xlane.xlu0 %561 }
  0xdd   : > { %v564_v6 = vmul.f32 0.03125, %v562_v5 }
  0xdf   : > { %v565_v7 = vsub.f32 %v558_v2, %v564_v6 }
  0xe0   : > { %v713_v8 = vpop.xlane.xlu0 %712 }
  0xe1   : > { %v715_v9 = vmul.f32 0.03125, %v713_v8  ;;  %v566_v10 = vmul.f32 %v565_v7, %v565_v7 }
  0xe3   : > { %v716_v11 = vsub.f32 %v2353_v1, %v715_v9  ;;  %v567_v12 = vsel %vm559_vm0, %v566_v10, 0.0 }
  0xe4   : > { %568 = vadd.xlane.f32.xlu1 %v567_v12 }
  0xe5   : > { %v717_v13 = vmul.f32 %v716_v11, %v716_v11 }
  0xe7   : > { %v718_v14 = vsel %vm559_vm0, %v717_v13, 0.0 }
  0xe8   : > { %719 = vadd.xlane.f32.xlu1 %v718_v14 }
 0x16d   : > { %v569_v18 = vpop.xlane.xlu1 %568 }
 0x16e   : > { %v570_v19 = vmul.f32 0.03125, %v569_v18 }
 0x170   : > { %v571_v20 = vadd.f32 1e-05, %v570_v19 }
 0x171   : > { %v720_v21 = vpop.xlane.xlu1 %719 }
 0x172   : > { %1964 = vrsqrt.f32 %v571_v20  ;;  %v721_v22 = vmul.f32 0.03125, %v720_v21 }
 0x174   : > { %v722_v23 = vadd.f32 1e-05, %v721_v22 }
 0x176   : > { %1966 = vrsqrt.f32 %v722_v23 }
 0x17f   : > { %v1965_v24 = vpop.eup %1964 }
 0x180   : > { %v573_v26 = vmul.f32 %v1965_v24, %v565_v7 }
 0x182   : > { %v580_v28 = vmul.f32 %v1712_v25, %v573_v26 }
 0x183   : > { %v1967_v32 = vpop.eup %1966 }
 0x184   : > { %v587_v29 = vadd.f32 %v1713_v27, %v580_v28  ;;  %v724_v34 = vmul.f32 %v1967_v32, %v716_v11 }
 0x186   : > { %v588_v31 = vpack.c.bf16 %v587_v29, %v587_v29  ;;  %v731_v36 = vmul.f32 %v1712_v25, %v724_v34 }
 0x188   : > { %1759 = vmatmul.mubr.msk.bf16.vlgmr.msra.gmra.mxu0 %vm559_vm0, %v588_v31  ;;  %v738_v38 = vadd.f32 %v1713_v27, %v731_v36 }
 0x189   : > { %1763 = vmatpush3.bf16.msra.mxu0 %v1946_v30  ;;  %1766 = vmatprep.mubr.msk.bf16.mxu0 %vm2133_vm1, %v2132_v16 }
 0x18a   : > { %1764 = vmatprep.subr.bf16.mxu0 %v2132_v16  ;;  %v739_v39 = vpack.c.bf16 %v738_v38, %v738_v38 }
 0x18d   : > { %1765 = vmatpush3.bf16.msra.mxu0 %v1947_v33 }
 0x18e   : > { %1770 = vmatprep.subr.bf16.mxu0 %v2132_v16 }
 0x190   : > { %1767 = vmatmul.mubr.msk.bf16.vlgmr.msra.gmra.mxu0 %vm559_vm0, %v588_v31 }
 0x191   : > { %1771 = vmatpush3.bf16.msra.mxu0 %v1948_v35  ;;  %1774 = vmatprep.mubr.msk.bf16.mxu0 %vm2133_vm1, %v2132_v16 }
 0x192   : > { %1772 = vmatprep.subr.bf16.mxu0 %v2132_v16 }
 0x195   : > { %1773 = vmatpush3.bf16.msra.mxu0 %v1949_v37 }
 0x196   : > { %1784 = vmatprep.subr.bf16.mxu0 %v2132_v16 }
 0x198   : > { %1775 = vmatmul.mubr.msk.bf16.vlgmr.msra.gmra.mxu0 %vm559_vm0, %v739_v39 }
 0x199   : > { %1786 = vmatprep.mubr.msk.bf16.mxu0 %vm2133_vm1, %v2132_v16 }
 0x248   : > { %v642_v40 = vpop.f32.mrf.mxu0 }
 0x249   : > { %v648_v41 = vpack.c.bf16 %v642_v40, %v642_v40 }
 0x24a   : > { %v1760_v42 = vpop.f32.mrf.mxu0 }
 0x24b   : > { %650 = vst.msk [vmem:[#allocation2] sm:$0xf] %vm649_vm2, %v648_v41 }
 0x24c   : > { %v645_v43 = vpop.f32.mrf.mxu0 }
 0x24e   : > { %v1761_v44 = vpop.f32.mrf.mxu0 }
 0x250   : > { %v701_v45 = vpop.f32.mrf.mxu0 }
 0x251   : > { %v707_v46 = vpack.c.bf16 %v701_v45, %v701_v45 }
 0x252   : > { %v1768_v47 = vpop.f32.mrf.mxu0  ;;  %v799_v48 = vld [vmem:[#allocation2] sm:$0xf] }
 0x253   : > { %708 = vst.msk [vmem:[#allocation3] sm:$0xf] %vm649_vm2, %v707_v46  ;;  %v807_v49 = vsel %vm802_vm3, %v799_v48, 0  ;;  %v1681_v50 = vcombine.low %v799_v48, %v799_v48 }
 0x254   : > { %v704_v51 = vpop.f32.mrf.mxu0  ;;  %1779 = vmatpush3.bf16.xpose.msra.mxu1 %v807_v49 }
 0x255   : > { %915 = vrot.lane.b32.xlu0 %v1681_v50, %s2134_s24  ;;  %1790 = vmatprep.subr.bf16.mxu1 %v2132_v16 }
 0x256   : > { %v1769_v52 = vpop.f32.mrf.mxu0 }
 0x258   : > { %v793_v53 = vpop.f32.mrf.mxu0 }
 0x259   : > { %v801_v54 = vpack.c.bf16 %v793_v53, %v793_v53  ;;  %1140 = vrot.lane.b32.xlu0 %v1681_v50, %s2135_s15 }
 0x25a   : > { %v1776_v55 = vpop.f32.mrf.mxu0  ;;  %v2410_v56 = vld [vmem:[#allocation3] sm:$0xf] }
 0x25b   : > { %910 = vrot.lane.b32.xlu1 %v801_v54, %s2134_s24  ;;  %1781 = vmatmul.mubr.msk.bf16.vlgmr.msra.gmra.mxu1 %vm802_vm3, %v801_v54  ;;  %v866_v57 = vsel %vm864_vm4, %v2410_v56, 0  ;;  %v1683_v42 = vcombine.low %v2410_v56, %v2410_v56 }
 0x25c   : > { %v796_v58 = vpop.f32.mrf.mxu0  ;;  %1785 = vmatpush3.bf16.msra.mxu0 %v866_v57  ;;  %1792 = vmatprep.mubr.msk.bf16.mxu1 %vm2133_vm1, %v2132_v16 }
 0x25d   : > { %1796 = vmatprep.subr.bf16.mxu0 %v2132_v16 }
 0x25e   : > { %v1777_v59 = vpop.f32.mrf.mxu0 }
 0x25f   : > { %1029 = vrot.lane.b32.xlu1 %v1681_v50, %s2136_s16 }
 0x263   : > { %1027 = vrot.lane.b32.xlu1 %v801_v54, %s2136_s16 }
 0x267   : > { %1138 = vrot.lane.b32.xlu1 %v801_v54, %s2135_s15 }
 0x2c7   : > { %v916_v60 = vpop.permute.xlu0 %915 }
 0x2c8   : > { %v921_v61 = vsel %vm802_vm3, %v916_v60, 0 }
 0x2c9   : > { %1791 = vmatpush3.bf16.xpose.msra.mxu1 %v921_v61 }
 0x2ca   : > { %1802 = vmatprep.subr.bf16.mxu1 %v2132_v16 }
 0x2cb   : > { %v1141_v2 = vpop.permute.xlu0 %1140 }
 0x2cc   : > { %v1146_v4 = vsel %vm802_vm3, %v1141_v2, 0 }
 0x2cd   : > { %v911_v62 = vpop.permute.xlu1 %910 }
 0x2d0   : > { %1793 = vmatmul.mubr.msk.bf16.vlgmr.msra.gmra.mxu1 %vm802_vm3, %v911_v62 }
 0x2d1   : > { %v1030_v63 = vpop.permute.xlu1 %1029  ;;  %1804 = vmatprep.mubr.msk.bf16.mxu1 %vm2133_vm1, %v2132_v16 }
 0x2d2   : > { %v1035_v0 = vsel %vm802_vm3, %v1030_v63, 0 }
 0x2d3   : > { %1803 = vmatpush3.bf16.xpose.msra.mxu1 %v1035_v0 }
 0x2d4   : > { %1814 = vmatprep.subr.bf16.mxu1 %v2132_v16 }
 0x2d5   : > { %v1028_v3 = vpop.permute.xlu1 %1027 }
 0x2d9   : > { %v1139_v5 = vpop.permute.xlu1 %1138 }
 0x2da   : > { %1805 = vmatmul.mubr.msk.bf16.vlgmr.msra.gmra.mxu1 %vm802_vm3, %v1028_v3 }
 0x2db   : > { %1815 = vmatpush3.bf16.xpose.msra.mxu1 %v1146_v4  ;;  %1816 = vmatprep.mubr.msk.bf16.mxu1 %vm2133_vm1, %v2132_v16 }
 0x2dc   : > { %1826 = vmatprep.subr.bf16.mxu1 %v2132_v16 }
 0x2e2   : > { %1817 = vmatmul.mubr.msk.bf16.vlgmr.msra.gmra.mxu1 %vm802_vm3, %v1139_v5 }
 0x2e3   : > { %1830 = vmatprep.mubr.msk.bf16.mxu1 %vm2133_vm1, %v2132_v16 }
 0x31b   : > { %v843_v6 = vpop.f32.mrf.mxu1 }
 0x31c   : > { %v849_v7 = vsel %vm802_vm3, %v843_v6, -inf }
 0x31d   : > { %850 = vmax.xlane.f32.xlu0 %v849_v7  ;;  %v1782_v8 = vpop.f32.mrf.mxu1 }
 0x31f   : > { %v846_v9 = vpop.f32.mrf.mxu1 }
 0x321   : > { %v1783_v10 = vpop.f32.mrf.mxu1 }
 0x390   : > { %v957_v11 = vpop.f32.mrf.mxu1 }
 0x391   : > { %v963_v12 = vsel %vm802_vm3, %v957_v11, -inf }
 0x392   : > { %964 = vmax.xlane.f32.xlu1 %v963_v12  ;;  %v1794_v13 = vpop.f32.mrf.mxu1  ;;  %v1952_v12 = vld [vmem:[%s2595_s7 + $0x8] sm:$0xff]  }
 0x393   : > { %1827 = vmatpush3.bf16.msra.mxu1 %v1952_v12 }
 0x394   : > { %v960_v14 = vpop.f32.mrf.mxu1  ;;  %1828 = vmatprep.subr.bf16.mxu1 %v2132_v16 }
 0x396   : > { %v1795_v15 = vpop.f32.mrf.mxu1 }
 0x397   : > { %v1953_v15 = vld [vmem:[%s2595_s7] sm:$0xff]  }
 0x398   : > { %1829 = vmatpush3.bf16.msra.mxu1 %v1953_v15 }
 0x399   : > { %1842 = vmatprep.subr.bf16.mxu1 %v2132_v16 }
 0x39a   : > { %v1071_v17 = vpop.f32.mrf.mxu1 }
 0x39b   : > { %v1077_v18 = vsel %vm802_vm3, %v1071_v17, -inf }
 0x39c   : > { %1078 = vmax.xlane.f32.xlu0 %v1077_v18  ;;  %v1806_v19 = vpop.f32.mrf.mxu1 }
 0x39e   : > { %v1074_v20 = vpop.f32.mrf.mxu1 }
 0x3a0   : > { %v1807_v21 = vpop.f32.mrf.mxu1 }
 0x3a2   : > { %v1182_v22 = vpop.f32.mrf.mxu1 }
 0x3a3   : > { %v1188_v23 = vsel %vm802_vm3, %v1182_v22, -inf }
 0x3a4   : > { %1189 = vmax.xlane.f32.xlu0 %v1188_v23  ;;  %v1818_v24 = vpop.f32.mrf.mxu1 }
 0x3a6   : > { %v851_v25 = vpop.xlane.xlu0 %850  ;;  %v1185_v26 = vpop.f32.mrf.mxu1 }
 0x3a7   : > { %v852_v27 = vsub.f32 %v843_v6, %v851_v25 }
 0x3a8   : > { %v1819_v28 = vpop.f32.mrf.mxu1 }
 0x3a9   : > { %v853_v29 = vmul.f32 1.442695, %v852_v27 }
 0x3ab   : > { %1968 = vpow2.f32 %v853_v29 }
 0x3b8   : > { %v1969_v30 = vpop.eup %1968 }
 0x3b9   : > { %v855_v31 = vsel %vm802_vm3, %v1969_v30, 0.0 }
 0x3ba   : > { %856 = vadd.xlane.f32.xlu0 %v855_v31 }
 0x41b   : > { %v965_v32 = vpop.xlane.xlu1 %964 }
 0x41c   : > { %v966_v33 = vsub.f32 %v957_v11, %v965_v32 }
 0x41e   : > { %v967_v34 = vmul.f32 1.442695, %v966_v33 }
 0x420   : > { %1970 = vpow2.f32 %v967_v34 }
 0x425   : > { %v1079_v35 = vpop.xlane.xlu0 %1078 }
 0x426   : > { %v1080_v36 = vsub.f32 %v1071_v17, %v1079_v35 }
 0x428   : > { %v1081_v37 = vmul.f32 1.442695, %v1080_v36 }
 0x42a   : > { %1972 = vpow2.f32 %v1081_v37  ;;  %v1692_v37 = vld [vmem:[%s2596_s8] ss:$0 sm:$0xff] }
 0x42d   : > { %v1971_v38 = vpop.eup %1970  ;;  %v1190_v43 = vpop.xlane.xlu0 %1189 }
 0x42e   : > { %v969_v39 = vsel %vm802_vm3, %v1971_v38, 0.0  ;;  %v1191_v45 = vsub.f32 %v1182_v22, %v1190_v43 }
 0x42f   : > { %970 = vadd.xlane.f32.xlu1 %v969_v39 }
 0x430   : > { %v1192_v46 = vmul.f32 1.442695, %v1191_v45 }
 0x437   : > { %v1973_v40 = vpop.eup %1972 }
 0x438   : > { %v1083_v41 = vsel %vm802_vm3, %v1973_v40, 0.0 }
 0x439   : > { %1084 = vadd.xlane.f32.xlu0 %v1083_v41 }
 0x440   : > { %1089 = vrot.lane.b32.xlu1 %v1683_v42, %s2136_s16  ;;  %s2042_s16 = scalar_lea.vmem %s2543_s25, 128 }
 0x441   : > { %p2043_p5 = scmp.ne.s32.totalorder %s2543_s25, %s2042_s16  ;;  %p2050_p13 = scmp.lt.s32.totalorder %s2048_s18, %s2042_s16 }
 0x443   : > { %v857_v44 = vpop.xlane.xlu0 %856  ;;  %p2051_p3 = por %p2050_p13, %p2049_p6 }
 0x444   : > { %1974 = vrcp.f32 %v857_v44 }
 0x445   : > { %1976 = vpow2.f32 %v1192_v46 }
 0x44f   : > { %978 = vrot.lane.b32.xlu0 %v1683_v42, %s2134_s24  ;;  %s2644_s24 = sld [smem:[#allocation22_spill]] }
 0x451   : > { %v1975_v47 = vpop.eup %1974 }
 0x452   : > { %v859_v48 = vmul.f32 %v1975_v47, %v1969_v30  ;;  %v1977_v50 = vpop.eup %1976 }
 0x453   : > { %v1194_v51 = vsel %vm802_vm3, %v1977_v50, 0.0 }
 0x454   : > { %v860_v49 = vpack.c.bf16 %v859_v48, %v859_v48 }
 0x456   : > { %1787 = vmatmul.mubr.msk.bf16.vlgmr.msra.gmra.mxu0 %vm802_vm3, %v860_v49  ;;  %v1954_v49 = vld [vmem:[#allocation7 + $0x8] sm:$0xff]  }
 0x457   : > { %1798 = vmatprep.mubr.msk.bf16.mxu0 %vm2133_vm1, %v2132_v16 }
 0x464   : > { %1195 = vadd.xlane.f32.xlu1 %v1194_v51  ;;  %v1957_v51 = vld [vmem:[%s2601_s13 + $0x30] sm:$0xff]  }
 0x475   : > { %1200 = vrot.lane.b32.xlu1 %v1683_v42, %s2135_s15  ;;  %s2541_s15 = scalar_lea.hbm %s2644_s24, %s1709_s20 }
 0x4b8   : > { %v971_v52 = vpop.xlane.xlu1 %970 }
 0x4b9   : > { %1978 = vrcp.f32 %v971_v52 }
 0x4bc   : > { %v1090_v58 = vpop.permute.xlu1 %1089 }
 0x4bd   : > { %v1095_v60 = vsel %vm864_vm4, %v1090_v58, 0  ;;  %v1694_v58 = vld [vmem:[%s2598_s10] ss:$0 sm:$0xff] }
 0x4c2   : > { %v1085_v53 = vpop.xlane.xlu0 %1084 }
 0x4c3   : > { %1980 = vrcp.f32 %v1085_v53 }
 0x4c6   : > { %v1979_v54 = vpop.eup %1978  ;;  %v979_v55 = vpop.permute.xlu0 %978 }
 0x4c7   : > { %v984_v56 = vsel %vm864_vm4, %v979_v55, 0  ;;  %v973_v57 = vmul.f32 %v1979_v54, %v1971_v38 }
 0x4c8   : > { %1797 = vmatpush3.bf16.msra.mxu0 %v984_v56  ;;  %v1693_v56 = vld [vmem:[%s2597_s9] ss:$0 sm:$0xff] }
 0x4c9   : > { %v974_v59 = vpack.c.bf16 %v973_v57, %v973_v57  ;;  %1808 = vmatprep.subr.bf16.mxu0 %v2132_v16 }
 0x4cb   : > { %1799 = vmatmul.mubr.msk.bf16.vlgmr.msra.gmra.mxu0 %vm802_vm3, %v974_v59 }
 0x4cc   : > { %1809 = vmatpush3.bf16.msra.mxu0 %v1095_v60  ;;  %1810 = vmatprep.mubr.msk.bf16.mxu0 %vm2133_vm1, %v2132_v16 }
 0x4cd   : > { %1820 = vmatprep.subr.bf16.mxu0 %v2132_v16 }
 0x4d0   : > { %v1981_v61 = vpop.eup %1980 }
 0x4d1   : > { %v1087_v62 = vmul.f32 %v1981_v61, %v1973_v40 }
 0x4d3   : > { %v1088_v63 = vpack.c.bf16 %v1087_v62, %v1087_v62  ;;  %v1958_v62 = vld [vmem:[%s2601_s13 + $0x28] sm:$0xff]  }
 0x4d5   : > { %1811 = vmatmul.mubr.msk.bf16.vlgmr.msra.gmra.mxu0 %vm802_vm3, %v1088_v63  ;;  %v1959_v63 = vld [vmem:[%s2601_s13 + $0x20] sm:$0xff]  }
 0x4d6   : > { %1822 = vmatprep.mubr.msk.bf16.mxu0 %vm2133_vm1, %v2132_v16 }
 0x4ed   : > { %v1196_v0 = vpop.xlane.xlu1 %1195 }
 0x4ee   : > { %1982 = vrcp.f32 %v1196_v0  ;;  %v1960_v0 = vld [vmem:[%s2601_s13 + $0x18] sm:$0xff]  }
 0x4f1   : > { %v1201_v2 = vpop.permute.xlu1 %1200 }
 0x4f2   : > { %v1206_v3 = vsel %vm864_vm4, %v1201_v2, 0  ;;  %v1961_v2 = vld [vmem:[%s2601_s13 + $0x10] sm:$0xff]  }
 0x4f3   : > { %1821 = vmatpush3.bf16.msra.mxu0 %v1206_v3  ;;  %v1962_v3 = vld [vmem:[%s2601_s13 + $0x8] sm:$0xff]  }
 0x4f4   : > { %1834 = vmatprep.subr.bf16.mxu0 %v2132_v16 }
 0x4fb   : > { %v1983_v4 = vpop.eup %1982 }
 0x4fc   : > { %v1198_v5 = vmul.f32 %v1983_v4, %v1977_v50  ;;  %v1956_v50 = vld [vmem:[%s2601_s13 + $0x38] sm:$0xff]   ;;  %v1963_v4 = vld [vmem:[%s2601_s13] sm:$0xff]  }
 0x4fe   : > { %v1199_v6 = vpack.c.bf16 %v1198_v5, %v1198_v5  ;;  %v1695_v5 = vld [vmem:[%s2600_s12] ss:$0 sm:$0xff] }
 0x500   : > { %1823 = vmatmul.mubr.msk.bf16.vlgmr.msra.gmra.mxu0 %vm802_vm3, %v1199_v6 }
 0x501   : > { %1838 = vmatprep.mubr.msk.bf16.mxu0 %vm2133_vm1, %v2132_v16  ;;  %1835 = vmatpush3.bf16.msra.mxu0 %v1954_v49 }
 0x502   : > { %1836 = vmatprep.subr.bf16.mxu0 %v2132_v16 }
 0x516   : > { %v902_v7 = vpop.f32.mrf.mxu0 }
 0x517   : > { %v908_v30 = vpack.c.bf16 %v902_v7, %v902_v7 }
 0x518   : > { %v1788_v8 = vpop.f32.mrf.mxu0 }
 0x51a   : > { %v905_v9 = vpop.f32.mrf.mxu0 }
 0x51c   : > { %v1789_v10 = vpop.f32.mrf.mxu0 }
 0x58b   : > { %v1020_v11 = vpop.f32.mrf.mxu0 }
 0x58c   : > { %v1026_v13 = vpack.c.bf16 %v1020_v11, %v1020_v11 }
 0x58d   : > { %v1800_v14 = vpop.f32.mrf.mxu0 }
 0x58e   : > { %1250 = vrot.lane.b32.xlu1 %v1026_v13, %s2137_s30 }
 0x58f   : > { %v1023_v17 = vpop.f32.mrf.mxu0 }
 0x591   : > { %v1801_v18 = vpop.f32.mrf.mxu0 }
 0x595   : > { %v1131_v19 = vpop.f32.mrf.mxu0 }
 0x596   : > { %v1137_v20 = vpack.c.bf16 %v1131_v19, %v1131_v19 }
 0x597   : > { %v1812_v21 = vpop.f32.mrf.mxu0 }
 0x598   : > { %1253 = vrot.lane.b32.xlu0 %v1137_v20, %s2138_s22  ;;  %s2642_s22 = sld [smem:[#allocation21_spill]] }
 0x599   : > { %v1134_v22 = vpop.f32.mrf.mxu0 }
 0x59b   : > { %v1813_v23 = vpop.f32.mrf.mxu0 }
 0x59e   : > { %v1707_v18 = vld [vmem:[%s2642_s22] ss:$0 sm:$0xff] }
 0x5c0   : > { %v1242_v24 = vpop.f32.mrf.mxu0 }
 0x5c1   : > { %v1248_v25 = vpack.c.bf16 %v1242_v24, %v1242_v24 }
 0x5c2   : > { %v1824_v26 = vpop.f32.mrf.mxu0 }
 0x5c3   : > { %1256 = vrot.lane.b32.xlu1 %v1248_v25, %s2139_s26  ;;  %s2643_s26 = sld [smem:[#allocation18_spill]] }
 0x5c4   : > { %v1245_v27 = vpop.f32.mrf.mxu0 }
 0x5c6   : > { %v1825_v28 = vpop.f32.mrf.mxu0 }
 0x5c9   : > { %p2645_p9 = scmp.ne.s32.totalorder %s2643_s26, 0 }
 0x5cb   : > { %p2044_p10 = pnand %p2043_p5, %p2645_p9 }
 0x5cd   : > { %p2045_p8 = pneg %p2044_p10 }
 0x5cf   : > { %p2052_p7 = pnand %p2051_p3, %p2045_p8 }
 0x600   : > { %v1251_v29 = vpop.permute.xlu1 %1250 }
 0x601   : > { %v1260_v32 = vsel %vm802_vm3, %v908_v30, %v1251_v29 }
 0x60a   : > { %v1254_v31 = vpop.permute.xlu0 %1253 }
 0x60b   : > { %v1263_v33 = vsel %vm1261_vm5, %v1260_v32, %v1254_v31 }
 0x635   : > { %v1257_v34 = vpop.permute.xlu1 %1256 }
 0x636   : > { %v1266_v35 = vsel %vm1264_vm6, %v1263_v33, %v1257_v34 }
 0x637   : > { %1831 = vmatmul.mubr.msk.bf16.vlgmr.msra.gmra.mxu1 %vm559_vm0, %v1266_v35 }
 0x638   : > { %1858 = vmatprep.mubr.msk.bf16.mxu1 %vm2133_vm1, %v2132_v16  ;;  %1843 = vmatpush3.bf16.msra.mxu1 %v1956_v50 }
 0x639   : > { %1844 = vmatprep.subr.bf16.mxu1 %v2132_v16 }
 0x63c   : > { %1845 = vmatpush3.bf16.msra.mxu1 %v1957_v51 }
 0x63d   : > { %1846 = vmatprep.subr.bf16.mxu1 %v2132_v16 }
 0x640   : > { %1847 = vmatpush3.bf16.msra.mxu1 %v1958_v62 }
 0x641   : > { %1848 = vmatprep.subr.bf16.mxu1 %v2132_v16 }
 0x644   : > { %1849 = vmatpush3.bf16.msra.mxu1 %v1959_v63 }
 0x645   : > { %1850 = vmatprep.subr.bf16.mxu1 %v2132_v16 }
 0x648   : > { %1851 = vmatpush3.bf16.msra.mxu1 %v1960_v0 }
 0x649   : > { %1852 = vmatprep.subr.bf16.mxu1 %v2132_v16 }
 0x64c   : > { %1853 = vmatpush3.bf16.msra.mxu1 %v1961_v2 }
 0x64d   : > { %1854 = vmatprep.subr.bf16.mxu1 %v2132_v16 }
 0x650   : > { %1855 = vmatpush3.bf16.msra.mxu1 %v1962_v3 }
 0x651   : > { %1856 = vmatprep.subr.bf16.mxu1 %v2132_v16 }
 0x654   : > { %1857 = vmatpush3.bf16.msra.mxu1 %v1963_v4 }
 0x6f7   : > { %v1319_v36 = vpop.f32.mrf.mxu1 }
 0x6f8   : > { %v1325_v38 = vadd.f32 %v1319_v36, %v2353_v1  ;;  %v1955_v1 = vld [vmem:[#allocation7] sm:$0xff]  }
 0x6f9   : > { %v1832_v39 = vpop.f32.mrf.mxu1  ;;  %1837 = vmatpush3.bf16.msra.mxu0 %v1955_v1 }
 0x6fa   : > { %v2484_v40 = vadd.f32 %v1692_v37, %v1325_v38 }
 0x6fb   : > { %v1322_v41 = vpop.f32.mrf.mxu1 }
 0x6fc   : > { %v1336_v42 = vsel %vm559_vm0, %v2484_v40, 0.0 }
 0x6fd   : > { %1337 = vadd.xlane.f32.xlu0 %v1336_v42  ;;  %v1833_v43 = vpop.f32.mrf.mxu1 }
 0x786   : > { %v1338_v44 = vpop.xlane.xlu0 %1337 }
 0x787   : > { %v1339_v45 = vmul.f32 0.03125, %v1338_v44 }
 0x789   : > { %v1340_v46 = vsub.f32 %v2484_v40, %v1339_v45 }
 0x78b   : > { %v1341_v47 = vmul.f32 %v1340_v46, %v1340_v46 }
 0x78d   : > { %v1342_v48 = vsel %vm559_vm0, %v1341_v47, 0.0 }
 0x78e   : > { %1343 = vadd.xlane.f32.xlu1 %v1342_v48 }
 0x817   : > { %v1344_v52 = vpop.xlane.xlu1 %1343 }
 0x818   : > { %v1345_v53 = vmul.f32 0.03125, %v1344_v52 }
 0x81a   : > { %v1346_v54 = vadd.f32 1e-05, %v1345_v53 }
 0x81c   : > { %1984 = vrsqrt.f32 %v1346_v54 }
 0x829   : > { %v1985_v55 = vpop.eup %1984 }
 0x82a   : > { %v1348_v57 = vmul.f32 %v1985_v55, %v1340_v46 }
 0x82c   : > { %v1355_v59 = vmul.f32 %v1693_v56, %v1348_v57 }
 0x82e   : > { %v1362_v60 = vadd.f32 %v1694_v58, %v1355_v59 }
 0x830   : > { %v1363_v61 = vpack.c.bf16 %v1362_v60, %v1362_v60 }
 0x832   : > { %1839 = vmatmul.mubr.msk.bf16.vlgmr.msra.gmra.mxu0 %vm559_vm0, %v1363_v61 }
 0x8f2   : > { %v1424_v6 = vpop.f32.mrf.mxu0 }
 0x8f3   : > { %v1425_v7 = vadd.f32 %v1695_v5, %v1424_v6 }
 0x8f4   : > { %v1840_v8 = vpop.f32.mrf.mxu0 }
 0x8f5   : > { %v1431_v9 = vmul.f32 0.70710677, %v1425_v7  ;;  %v1430_v16 = vmul.f32 0.5, %v1425_v7 }
 0x8f6   : > { %v1427_v10 = vpop.f32.mrf.mxu0 }
 0x8f7   : > { %1986 = verf.f32 %v1431_v9 }
 0x8f8   : > { %v1841_v11 = vpop.f32.mrf.mxu0 }
 0x904   : > { %v1987_v12 = vpop.eup %1986 }
 0x905   : > { %v1433_v13 = vadd.f32 1.0, %v1987_v12 }
 0x907   : > { %v1434_v14 = vmul.f32 %v1433_v13, %v1430_v16 }
 0x909   : > { %v1435_v15 = vpack.c.bf16 %v1434_v14, %v1434_v14 }
 0x90b   : > { %1859 = vmatmul.mubr.bf16.vlgmr.msra.gmra.mxu1 %v1435_v15 }
 0x9cb   : > { %v1534_v17 = vpop.f32.mrf.mxu1 }
 0x9cc   : > { %v1540_v19 = vadd.f32 %v1534_v17, %v2484_v40 }
 0x9cd   : > { %v1860_v20 = vpop.f32.mrf.mxu1 }
 0x9ce   : > { %v1548_v21 = vadd.f32 %v1707_v18, %v1540_v19 }
 0x9cf   : > { %v1537_v22 = vpop.f32.mrf.mxu1 }
 0x9d0   : > { %1549 = vst.msk [vmem:[%s542_s27] sm:$0xff] %vm559_vm0, %v1548_v21 }
 0x9d1   : > { %v1861_v23 = vpop.f32.mrf.mxu1 }
 0x9d2   : > { %2055 = shalt.err (!%p2052_p7)
}
 0x9d3   : > { %s2056_s30 = scalar_lea.hbm %s2541_s15, 128  ;;  %s2060_s20 = scalar_lea.hbm %s2644_s24, 256 }
 0x9d4   : > { %p2057_p4 = scmp.ne.s32.totalorder %s2541_s15, %s2056_s30  ;;  %p2061_p0 = scmp.lt.s32.totalorder %s2541_s15, %s2644_s24 }
 0x9d5   : > { %p2062_p1 = scmp.lt.s32.totalorder %s2060_s20, %s2056_s30 }
 0x9d6   : > { %p2058_p12 = pnand %p2057_p4, %p2645_p9 }
 0x9d7   : > { %p2063_p2 = por %p2062_p1, %p2061_p0 }
 0x9d8   : > { %p2059_p11 = pneg %p2058_p12 }
 0x9da   : > { %p2064_p5 = pnand %p2063_p2, %p2059_p11 }
 0x9dc   : > { %2067 = shalt.err (!%p2064_p5)
}
 0x9dd   : > { %1868 = dma.vmem_to_hbm [thread:$0]  (%p2645_p9), %s2543_s25, 128, %s2541_s15, %s1551_s21  }
 0x9de PF: > { %s2646_s28 = sld [smem:[#allocation16_spill]] }
 0x9df   : > { %s2647_s16 = sld [smem:[#allocation13_spill]] }
 0x9e0   : > { %s2648_s17 = sld [smem:[#allocation19_spill]] }
 0x9e4   : > { %p1883_p10 = scmp.ge.s32.totalorder %s2646_s28, 2 }
 0x9e5   : > { %s1577_s14 = sand.u32 1, %s2647_s16  }
 0x9e6   : > { %p2649_p8 = scmp.ne.s32.totalorder %s2648_s17, 0  ;;  %s1578_s18 = scalar_lea.sflag [#allocation6], %s1577_s14 }
 0x9e8   : > { %p1878_p6 = pnand %p1883_p10, %p2649_p8 }
 0x9ea   : > { %p1879_p13 = pneg %p1878_p6 }
 0x9ec   : > { %2101 = dma.done.wait (%p1879_p13), %s1578_s18, 128  }
 0x9ed   : > { %2103 = vsyncadd (%p1879_p13), %s1578_s18, 4294967168  ;;  %s30_s23 = sadd.s32 1, %s2646_s28   ;;  %s2650_s26 = sld [smem:[#allocation14_spill]] }
 0x9ee   : > { %p27_p3 = scmp.ge.s32.totalorder %s30_s23, 4   ;;  %s2651_s20 = sld [smem:[#allocation20_spill]] }
 0x9ef   : > { %s2652_s21 = sld [smem:[#allocation15_spill]]  ;;  %s2654_s18 = smov %s2110_s19 }
 0x9f0   : > { %s2653_s22 = sld [smem:[#allocation17_spill]]  ;;  %29 = sbr.rel (!%p27_p3) target bundleno = 9 (0x9), region = 129 }
 0x9f3   : > { %s2655_s19 = smov %s2650_s26 }
 0x9f5   :  { %1583 = vsyncpa [#allocation5], 1 }
 0x9f6   :  { %1585 = vsyncpa [#allocation5 + $0x1], 1 }
 0x9f7   :  { %1586 = vsyncpa [#allocation8], 1 }
 0x9f8   :  { %1587 = vsyncpa [#allocation6], 1 }
 0x9f9   :  { %1589 = vsyncpa [#allocation6 + $0x1], 1 }

// kernel: tpu_custom_call.1
= control target key start
LH: loop header
LB: loop body
LE: loop exit
PB: predicated region body
PF: predicated region fallthrough
CT: control target
= control target key end

     0   :  { %s2619_s0 = inlined_call_operand.vmem [shape: f32[2,8,32], index: 0, kind: input, shape index: {}]   ;;  %s2620_s1 = inlined_call_operand.hbm [shape: bf16[2,8,32], index: 1, kind: input, shape index: {}]   ;;  %s2621_s2 = inlined_call_operand.vmem [shape: f32[1,32], index: 2, kind: input, shape index: {}]   ;;  %s2622_s3 = inlined_call_operand.vmem [shape: f32[1,32], index: 3, kind: input, shape index: {}]   ;;  %s2623_s4 = inlined_call_operand.vmem [shape: bf16[32,32], index: 4, kind: input, shape index: {}]   ;;  %s2624_s5 = inlined_call_operand.vmem [shape: bf16[32,32], index: 5, kind: input, shape index: {}]   ;;  %s2625_s6 = inlined_call_operand.vmem [shape: bf16[32,32], index: 6, kind: input, shape index: {}]   ;;  %s2626_s7 = inlined_call_operand.vmem [shape: bf16[32,32], index: 7, kind: input, shape index: {}]   ;;  %s2627_s8 = inlined_call_operand.vmem [shape: f32[1,32], index: 8, kind: input, shape index: {}]   ;;  %s2628_s9 = inlined_call_operand.vmem [shape: f32[1,32], index: 9, kind: input, shape index: {}]   ;;  %s2629_s10 = inlined_call_operand.vmem [shape: f32[1,32], index: 10, kind: input, shape index: {}]   ;;  %s2630_s11 = inlined_call_operand.hbm [shape: bf16[32,128], index: 11, kind: input, shape index: {}]   ;;  %s2631_s12 = inlined_call_operand.vmem [shape: f32[1,128], index: 12, kind: input, shape index: {}]   ;;  %s2632_s13 = inlined_call_operand.vmem [shape: bf16[128,32], index: 13, kind: input, shape index: {}]   ;;  %s2633_s14 = inlined_call_operand.vmem [shape: f32[1,32], index: 14, kind: input, shape index: {}]   ;;  %s2634_s15 = inlined_call_operand.hbm [shape: f32[2,8,32], index: 15, kind: output, shape index: {}]  }
   0x1   :  { %2642 = sst [smem:[#allocation17_spill]] %s2627_s8 }
   0x2   :  { %2643 = sst [smem:[#allocation18_spill]] %s2628_s9 }
   0x3   :  { %2644 = sst [smem:[#allocation19_spill]] %s2629_s10 }
   0x4   :  { %2645 = sst [smem:[#allocation20_spill]] %s2630_s11 }
   0x5   :  { %2646 = sst [smem:[#allocation21_spill]] %s2631_s12 }
   0x6   :  { %2647 = sst [smem:[#allocation22_spill]] %s2632_s13 }
   0x7   :  { %2648 = sst [smem:[#allocation23_spill]] %s2633_s14 }
   0x8   :  { %2649 = sst [smem:[#allocation24_spill]] %s2634_s15 }
   0x9   :  { %20 = vsyncpa [#allocation5], 0 }
   0xa   :  { %22 = vsyncpa [#allocation5 + $0x1], 0 }
   0xb   :  { %23 = vsyncpa [#allocation8], 0 }
   0xc   :  { %24 = vsyncpa [#allocation6], 0 }
   0xd   :  { %26 = vsyncpa [#allocation6 + $0x1], 0  ;;  %s2250_s18 = smov 0   ;;  %s2252_s19 = smov 0  }
   0xe   :  { %s2254_s20 = smov 0   ;;  %s2256_s21 = smov 0  }
   0xf   :  { %s2258_s22 = smov 0   ;;  %s2260_s23 = smov 0  }
  0x10 LB: > { %2650 = sst [smem:[#allocation13_spill]] %s2135_s18  ;;  %s1686_s24 = sadd.s32 4294967295, %s2155_s23   ;;  %s2155_s23 = sphi %s2260_s23, %s32_s23   ;;  %s2151_s22 = sphi %s2258_s22, %s2678_s22   ;;  %s2147_s21 = sphi %s2256_s21, %s2677_s21   ;;  %s2143_s20 = sphi %s2254_s20, %s2681_s20   ;;  %s2139_s19 = sphi %s2252_s19, %s2680_s19   ;;  %s2135_s18 = sphi %s2250_s18, %s2679_s18  }
  0x11   : > { %2651 = sst [smem:[#allocation14_spill]] %s2151_s22  ;;  %s1687_s25 = sadd.s32 4294967294, %s2155_s23  }
  0x12   : > { %p92_p0 = scmp.ne.s32.totalorder %s2139_s19, %s2135_s18  ;;  %p2284_p1 = scmp.eq.s32.totalorder %s1686_s24, 0 }
  0x13   : > { %p2288_p2 = scmp.eq.s32.totalorder %s1686_s24, 1  ;;  %p397_p3 = scmp.eq.s32.totalorder %s1687_s25, 1 }
  0x14   : > { %p2294_p4 = por %p2284_p1, %p92_p0  ;;  %p1688_p5 = scmp.ge.s32.totalorder %s2155_s23, 1 }
  0x15   : > { %p2299_p6 = por %p397_p3, %p92_p0  ;;  %p404_p7 = scmp.lt.s32.totalorder %s2155_s23, 3 }
  0x16   : > { %s2654_s28 = scalar_select %p2294_p4, 1, 0 }
  0x17   : > { %s2655_s29 = scalar_select %p2299_p6, 1, 0 }
  0x18   : > { %p2304_p8 = pnand %p1688_p5, %p404_p7  ;;  %s2157_s16 = smov [#allocation7]  }
  0x19   : > { %2656 = sst [smem:[#allocation15_spill]] %s2655_s29  ;;  %s443_s17 = sshll.u32 %s2157_s16, 4  ;;  %s444_s17 = int_to_ptr.vmem [resolvable:$true] %s443_s17 }
  0x1a   : > { %p1898_p9 = pneg %p2304_p8  ;;  %s44_s25 = sadd.s32 1, %s2151_s22 }
  0x1b   : > { %s2028_s29 = scalar_lea.vmem %s444_s17, 256  ;;  %p2036_p5 = scmp.lt.s32.totalorder %s444_s17, %s444_s17 }
  0x1c   : > { %p2313_p11 = pnand %p1898_p9, %p2284_p1  ;;  %p2029_p13 = scmp.ne.s32.totalorder %s444_s17, %s2028_s29 }
  0x1d   : > { %p2037_p7 = scmp.lt.s32.totalorder %s2028_s29, %s2028_s29 }
  0x1e   : > { %p2019_p12 = pneg %p2313_p11 }
  0x1f   : > { %p2038_p6 = por %p2037_p7, %p2036_p5 }
  0x20   : > { %p2031_p0 = pnand %p2029_p13, %p2019_p12 }
  0x22   : > { %p2032_p3 = pneg %p2031_p0 }
  0x24   : > { %p2039_p4 = pnand %p2038_p6, %p2032_p3 }
  0x26   : > { %2042 = shalt.err (!%p2039_p4)
}
  0x27   : > { %s2158_s16 = smov 64   ;;  %s2159_s18 = smov 4  }
  0x28   : > { %s2659_s11 = sld [smem:[#allocation20_spill]]  ;;  %p46_p6 = scmp.ge.s32.totalorder %s44_s25, 2 }
  0x29   : > { %s79_s29 = sadd.s32 1, %s2143_s20  ;;  %p86_p4 = scmp.ne.s32.totalorder %s2143_s20, %s2139_s19 }
  0x2a   : > { %p87_p9 = scmp.eq.s32.totalorder %s2155_s23, 0  ;;  %s2683_s25 = smov (%p46_p6, %s44_s25), 0 }
  0x2b   : > { %2660 = sst [smem:[#allocation16_spill]] %s2683_s25  ;;  %p2337_p13 = por %p2288_p2, %p86_p4 }
  0x2c   : > { %p2331_p12 = por %p87_p9, %p86_p4  ;;  %s76_s24 = ssub.s32 %s2151_s22, %s2683_s25 }
  0x2d   : > { %p1911_p0 = scmp.lt.s32.totalorder %s2155_s23, 2  ;;  %s476_s14 = sand.u32 1, %s2143_s20  }
  0x2e   : > { %1901 = dma.hbm_to_vmem [thread:$0]  (!%p2313_p11), %s2659_s11, 256, %s444_s17, [#allocation8], %s2158_s16, %s2158_s16, %s2159_s18  }
  0x2f   : > { %p77_p11 = scmp.eq.s32.totalorder %s76_s24, 0  ;;  %s1691_s15 = sshll.u32 %s476_s14, 2 }
  0x30   : > { %s1692_s17 = sshll.u32 %s2151_s22, 6  ;;  %s480_s13 = scalar_lea.vmem [#allocation4], %s1691_s15 }
  0x31   : > { %s2346_s18 = scalar_select %p77_p11, %s2143_s20, %s79_s29  }
  0x32   : > { %s485_s9 = scalar_lea.hbm %s2620_s1, %s1692_s17  ;;  %s487_s8 = sshll.u32 %s480_s13, 4  ;;  %s488_s8 = int_to_ptr.vmem [resolvable:$true] %s487_s8 }
  0x33   : > { %p2354_p2 = pnand %p1911_p0, %p2331_p12  ;;  %s477_s25 = scalar_lea.sflag [#allocation5], %s476_s14 }
  0x34   : > { %s2056_s24 = scalar_lea.vmem %s488_s8, 64  ;;  %s2160_s29 = smov [#allocation4]  }
  0x35   : > { %p2045_p3 = pneg %p2354_p2  ;;  %p2057_p5 = scmp.ne.s32.totalorder %s488_s8, %s2056_s24 }
  0x36   : > { %s2061_s22 = sshll.u32 %s2160_s29, 4  ;;  %s2062_s22 = int_to_ptr.vmem [resolvable:$false] %s2061_s22 }
  0x37   : > { %p2059_p7 = pnand %p2057_p5, %p2045_p3  ;;  %s2063_s11 = scalar_lea.vmem %s2062_s22, 128 }
  0x38   : > { %p2064_p4 = scmp.lt.s32.totalorder %s488_s8, %s2062_s22  ;;  %p2065_p9 = scmp.lt.s32.totalorder %s2063_s11, %s2056_s24 }
  0x39   : > { %p2060_p6 = pneg %p2059_p7 }
  0x3a   : > { %p2066_p11 = por %p2065_p9, %p2064_p4 }
  0x3c   : > { %p2067_p10 = pnand %p2066_p11, %p2060_p6 }
  0x3e   : > { %2070 = shalt.err (!%p2067_p10)
}
  0x3f   : > { %1905 = dma.hbm_to_vmem [thread:$0]  (!%p2354_p2), %s485_s9, 64, %s488_s8, %s477_s25  }
  0x40   : > { %496 = sbr.rel (%p2304_p8) target bundleno = 2519 (0x9d7), region = 80  ;;  %s2365_s12 = sand.u32 (!%p2304_p8), 1, %s2139_s19  }
  0x41   : > { %s1694_s13 = sshll.u32 (!%p2304_p8), %s2365_s12, 2  ;;  %s499_s14 = scalar_lea.sflag (!%p2304_p8), [#allocation5], %s2365_s12 }
  0x42   : > { %s502_s15 = scalar_lea.vmem (!%p2304_p8), [#allocation4], %s1694_s13  ;;  %p2664_p12 = scmp.ne.s32.totalorder (!%p2304_p8), %s2654_s28, 0 }
  0x45   : > { %2122 = dma.done.wait (%p2664_p12), %s499_s14, 64  }
  0x46   : > { %2124 = vsyncadd (%p2664_p12), %s499_s14, 4294967232 }
  0x47   : > { %2126 = dma.done.wait (%p2284_p1), [#allocation8], 256  }
  0x48   : > { %2128 = vsyncadd (%p2284_p1), [#allocation8], 4294967040  ;;  %p560_p8 = scmp.lt.s32.totalorder %s2147_s21, 1  ;;  %v574_v0 = vld [vmem:[%s502_s15] sm:$0xf]  ;;  %vm576_vm0 = vcmask 261120  }
  0x49   : > { %v575_v2 = vunpack.c.l.bf16 %v574_v0  ;;  %v1973_v15 = vld [vmem:[%s2624_s5 + $0x8] sm:$0xff]   ;;  %v2161_v16 = vmov 0.0   ;;  %vm2162_vm1 = vmmov 0   ;;  %v1974_v17 = vld [vmem:[%s2624_s5] sm:$0xff]   ;;  %vm666_vm2 = vcmask 257024   ;;  %s2163_s26 = smov 120  }
  0x4a   : > { %s561_s8 = scalar_select %p560_p8, %s2147_s21, 1  ;;  %1782 = vmatprep.subr.bf16.mxu0 %v2161_v16  ;;  %1786 = vmatprep.mubr.msk.bf16.mxu0 %vm2162_vm1, %v2161_v16  ;;  %v1740_v25 = vld [vmem:[%s2621_s2] ss:$0 sm:$0xff]  ;;  %v1975_v30 = vld [vmem:[%s2625_s6 + $0x8] sm:$0xff]   ;;  %vm819_vm3 = vcmask 64512   ;;  %vm881_vm4 = vcmask 1043456  }
  0x4b   : > { %v577_v3 = vsel %vm576_vm0, %v575_v2, 0.0  ;;  %1783 = vmatpush3.bf16.msra.mxu0 %v1973_v15  ;;  %1806 = vmatprep.subr.bf16.mxu1 %v2161_v16  ;;  %v1741_v27 = vld [vmem:[%s2622_s3] ss:$0 sm:$0xff]  ;;  %v1977_v35 = vld [vmem:[%s2623_s4 + $0x8] sm:$0xff]   ;;  %s2164_s28 = smov 104   ;;  %s2165_s17 = smov 112  }
  0x4c   : > { %s1697_s9 = sshll.u32 %s561_s8, 3  ;;  %578 = vadd.xlane.f32.xlu0 %v577_v3  ;;  %1784 = vmatprep.subr.bf16.mxu0 %v2161_v16  ;;  %v1976_v33 = vld [vmem:[%s2625_s6] sm:$0xff]   ;;  %s2166_s11 = smov 8   ;;  %vm1278_vm5 = vcmask 130048   ;;  %vm1281_vm6 = vcmask 195584  }
  0x4d   : > { %s566_s25 = scalar_lea.vmem %s2619_s0, %s1697_s9  ;;  %1808 = vmatprep.mubr.msk.bf16.mxu1 %vm2162_vm1, %v2161_v16  ;;  %v1978_v37 = vld [vmem:[%s2623_s4] sm:$0xff]   ;;  %s2167_s13 = smov 16  }
  0x4e   : > { %v2382_v1 = vld [vmem:[%s566_s25] sm:$0xff]  ;;  %s2168_s14 = smov 24   ;;  %s2665_s9 = sld [smem:[#allocation17_spill]] }
  0x4f   : > { %v728_v4 = vsel %vm576_vm0, %v2382_v1, 0.0  ;;  %1785 = vmatpush3.bf16.msra.mxu0 %v1974_v17  ;;  %s2666_s25 = sld [smem:[#allocation22_spill]]  ;;  %s2169_s24 = smov [#allocation9]  }
  0x50   : > { %729 = vadd.xlane.f32.xlu0 %v728_v4  ;;  %1790 = vmatprep.subr.bf16.mxu0 %v2161_v16  ;;  %s2667_s27 = sld [smem:[#allocation18_spill]]  ;;  %s2075_s29 = sshll.u32 %s2169_s24, 4  ;;  %s2076_s29 = int_to_ptr.vmem [resolvable:$false] %s2075_s29 }
  0x51   : > { %s2670_s8 = sld [smem:[#allocation23_spill]] }
  0xd5   : > { %v579_v5 = vpop.xlane.xlu0 %578 }
  0xd6   : > { %v581_v6 = vmul.f32 0.03125, %v579_v5 }
  0xd8   : > { %v582_v7 = vsub.f32 %v575_v2, %v581_v6 }
  0xd9   : > { %v730_v8 = vpop.xlane.xlu0 %729 }
  0xda   : > { %v732_v9 = vmul.f32 0.03125, %v730_v8  ;;  %v583_v10 = vmul.f32 %v582_v7, %v582_v7 }
  0xdc   : > { %v733_v11 = vsub.f32 %v2382_v1, %v732_v9  ;;  %v584_v12 = vsel %vm576_vm0, %v583_v10, 0.0 }
  0xdd   : > { %585 = vadd.xlane.f32.xlu1 %v584_v12 }
  0xde   : > { %v734_v13 = vmul.f32 %v733_v11, %v733_v11 }
  0xe0   : > { %v735_v14 = vsel %vm576_vm0, %v734_v13, 0.0 }
  0xe1   : > { %736 = vadd.xlane.f32.xlu1 %v735_v14 }
 0x166   : > { %v586_v18 = vpop.xlane.xlu1 %585 }
 0x167   : > { %v587_v19 = vmul.f32 0.03125, %v586_v18 }
 0x169   : > { %v588_v20 = vadd.f32 1e-05, %v587_v19 }
 0x16a   : > { %v737_v21 = vpop.xlane.xlu1 %736 }
 0x16b   : > { %1993 = vrsqrt.f32 %v588_v20  ;;  %v738_v22 = vmul.f32 0.03125, %v737_v21 }
 0x16d   : > { %v739_v23 = vadd.f32 1e-05, %v738_v22 }
 0x16f   : > { %1995 = vrsqrt.f32 %v739_v23 }
 0x178   : > { %v1994_v24 = vpop.eup %1993 }
 0x179   : > { %v590_v26 = vmul.f32 %v1994_v24, %v582_v7 }
 0x17b   : > { %v597_v28 = vmul.f32 %v1740_v25, %v590_v26 }
 0x17c   : > { %v1996_v32 = vpop.eup %1995 }
 0x17d   : > { %v604_v29 = vadd.f32 %v1741_v27, %v597_v28  ;;  %v741_v34 = vmul.f32 %v1996_v32, %v733_v11 }
 0x17f   : > { %v605_v31 = vpack.c.bf16 %v604_v29, %v604_v29  ;;  %v748_v36 = vmul.f32 %v1740_v25, %v741_v34 }
 0x181   : > { %1787 = vmatmul.mubr.msk.bf16.vlgmr.msra.gmra.mxu0 %vm576_vm0, %v605_v31  ;;  %v755_v38 = vadd.f32 %v1741_v27, %v748_v36 }
 0x182   : > { %1791 = vmatpush3.bf16.msra.mxu0 %v1975_v30  ;;  %1794 = vmatprep.mubr.msk.bf16.mxu0 %vm2162_vm1, %v2161_v16 }
 0x183   : > { %1792 = vmatprep.subr.bf16.mxu0 %v2161_v16  ;;  %v756_v39 = vpack.c.bf16 %v755_v38, %v755_v38 }
 0x186   : > { %1793 = vmatpush3.bf16.msra.mxu0 %v1976_v33 }
 0x187   : > { %1798 = vmatprep.subr.bf16.mxu0 %v2161_v16 }
 0x189   : > { %1795 = vmatmul.mubr.msk.bf16.vlgmr.msra.gmra.mxu0 %vm576_vm0, %v605_v31 }
 0x18a   : > { %1799 = vmatpush3.bf16.msra.mxu0 %v1977_v35  ;;  %1802 = vmatprep.mubr.msk.bf16.mxu0 %vm2162_vm1, %v2161_v16 }
 0x18b   : > { %1800 = vmatprep.subr.bf16.mxu0 %v2161_v16 }
 0x18e   : > { %1801 = vmatpush3.bf16.msra.mxu0 %v1978_v37 }
 0x18f   : > { %1812 = vmatprep.subr.bf16.mxu0 %v2161_v16 }
 0x191   : > { %1803 = vmatmul.mubr.msk.bf16.vlgmr.msra.gmra.mxu0 %vm576_vm0, %v756_v39 }
 0x192   : > { %1814 = vmatprep.mubr.msk.bf16.mxu0 %vm2162_vm1, %v2161_v16 }
 0x241   : > { %v659_v40 = vpop.f32.mrf.mxu0 }
 0x242   : > { %v665_v41 = vpack.c.bf16 %v659_v40, %v659_v40 }
 0x243   : > { %v1788_v42 = vpop.f32.mrf.mxu0 }
 0x244   : > { %667 = vst.msk [vmem:[#allocation2] sm:$0xf] %vm666_vm2, %v665_v41 }
 0x245   : > { %v662_v43 = vpop.f32.mrf.mxu0 }
 0x247   : > { %v1789_v44 = vpop.f32.mrf.mxu0 }
 0x249   : > { %v718_v45 = vpop.f32.mrf.mxu0 }
 0x24a   : > { %v724_v46 = vpack.c.bf16 %v718_v45, %v718_v45 }
 0x24b   : > { %v1796_v47 = vpop.f32.mrf.mxu0  ;;  %v816_v48 = vld [vmem:[#allocation2] sm:$0xf] }
 0x24c   : > { %725 = vst.msk [vmem:[#allocation3] sm:$0xf] %vm666_vm2, %v724_v46  ;;  %v824_v49 = vsel %vm819_vm3, %v816_v48, 0  ;;  %v1709_v50 = vcombine.low %v816_v48, %v816_v48 }
 0x24d   : > { %v721_v51 = vpop.f32.mrf.mxu0  ;;  %1807 = vmatpush3.bf16.xpose.msra.mxu1 %v824_v49 }
 0x24e   : > { %932 = vrot.lane.b32.xlu0 %v1709_v50, %s2163_s26  ;;  %1818 = vmatprep.subr.bf16.mxu1 %v2161_v16 }
 0x24f   : > { %v1797_v52 = vpop.f32.mrf.mxu0 }
 0x251   : > { %v810_v53 = vpop.f32.mrf.mxu0 }
 0x252   : > { %v818_v54 = vpack.c.bf16 %v810_v53, %v810_v53  ;;  %1157 = vrot.lane.b32.xlu0 %v1709_v50, %s2164_s28 }
 0x253   : > { %v1804_v55 = vpop.f32.mrf.mxu0  ;;  %v2439_v56 = vld [vmem:[#allocation3] sm:$0xf] }
 0x254   : > { %927 = vrot.lane.b32.xlu1 %v818_v54, %s2163_s26  ;;  %1809 = vmatmul.mubr.msk.bf16.vlgmr.msra.gmra.mxu1 %vm819_vm3, %v818_v54  ;;  %v883_v57 = vsel %vm881_vm4, %v2439_v56, 0  ;;  %v1711_v42 = vcombine.low %v2439_v56, %v2439_v56 }
 0x255   : > { %v813_v58 = vpop.f32.mrf.mxu0  ;;  %1813 = vmatpush3.bf16.msra.mxu0 %v883_v57  ;;  %1820 = vmatprep.mubr.msk.bf16.mxu1 %vm2162_vm1, %v2161_v16 }
 0x256   : > { %1824 = vmatprep.subr.bf16.mxu0 %v2161_v16 }
 0x257   : > { %v1805_v59 = vpop.f32.mrf.mxu0 }
 0x258   : > { %1046 = vrot.lane.b32.xlu1 %v1709_v50, %s2165_s17 }
 0x25c   : > { %1044 = vrot.lane.b32.xlu1 %v818_v54, %s2165_s17 }
 0x260   : > { %1155 = vrot.lane.b32.xlu1 %v818_v54, %s2164_s28 }
 0x2c0   : > { %v933_v60 = vpop.permute.xlu0 %932 }
 0x2c1   : > { %v938_v61 = vsel %vm819_vm3, %v933_v60, 0 }
 0x2c2   : > { %1819 = vmatpush3.bf16.xpose.msra.mxu1 %v938_v61 }
 0x2c3   : > { %1830 = vmatprep.subr.bf16.mxu1 %v2161_v16 }
 0x2c4   : > { %v1158_v2 = vpop.permute.xlu0 %1157 }
 0x2c5   : > { %v1163_v4 = vsel %vm819_vm3, %v1158_v2, 0 }
 0x2c6   : > { %v928_v62 = vpop.permute.xlu1 %927 }
 0x2c9   : > { %1821 = vmatmul.mubr.msk.bf16.vlgmr.msra.gmra.mxu1 %vm819_vm3, %v928_v62 }
 0x2ca   : > { %v1047_v63 = vpop.permute.xlu1 %1046  ;;  %1832 = vmatprep.mubr.msk.bf16.mxu1 %vm2162_vm1, %v2161_v16 }
 0x2cb   : > { %v1052_v0 = vsel %vm819_vm3, %v1047_v63, 0 }
 0x2cc   : > { %1831 = vmatpush3.bf16.xpose.msra.mxu1 %v1052_v0 }
 0x2cd   : > { %1842 = vmatprep.subr.bf16.mxu1 %v2161_v16 }
 0x2ce   : > { %v1045_v3 = vpop.permute.xlu1 %1044 }
 0x2d2   : > { %v1156_v5 = vpop.permute.xlu1 %1155 }
 0x2d3   : > { %1833 = vmatmul.mubr.msk.bf16.vlgmr.msra.gmra.mxu1 %vm819_vm3, %v1045_v3 }
 0x2d4   : > { %1843 = vmatpush3.bf16.xpose.msra.mxu1 %v1163_v4  ;;  %1844 = vmatprep.mubr.msk.bf16.mxu1 %vm2162_vm1, %v2161_v16 }
 0x2d5   : > { %1854 = vmatprep.subr.bf16.mxu1 %v2161_v16 }
 0x2db   : > { %1845 = vmatmul.mubr.msk.bf16.vlgmr.msra.gmra.mxu1 %vm819_vm3, %v1156_v5 }
 0x2dc   : > { %1858 = vmatprep.mubr.msk.bf16.mxu1 %vm2162_vm1, %v2161_v16 }
 0x314   : > { %v860_v6 = vpop.f32.mrf.mxu1 }
 0x315   : > { %v866_v7 = vsel %vm819_vm3, %v860_v6, -inf }
 0x316   : > { %867 = vmax.xlane.f32.xlu0 %v866_v7  ;;  %v1810_v8 = vpop.f32.mrf.mxu1 }
 0x318   : > { %v863_v9 = vpop.f32.mrf.mxu1 }
 0x31a   : > { %v1811_v10 = vpop.f32.mrf.mxu1 }
 0x389   : > { %v974_v11 = vpop.f32.mrf.mxu1 }
 0x38a   : > { %v980_v12 = vsel %vm819_vm3, %v974_v11, -inf }
 0x38b   : > { %981 = vmax.xlane.f32.xlu1 %v980_v12  ;;  %v1822_v13 = vpop.f32.mrf.mxu1  ;;  %v1981_v12 = vld [vmem:[%s2626_s7 + $0x8] sm:$0xff]  }
 0x38c   : > { %1855 = vmatpush3.bf16.msra.mxu1 %v1981_v12 }
 0x38d   : > { %v977_v14 = vpop.f32.mrf.mxu1  ;;  %1856 = vmatprep.subr.bf16.mxu1 %v2161_v16 }
 0x38f   : > { %v1823_v15 = vpop.f32.mrf.mxu1 }
 0x390   : > { %v1982_v15 = vld [vmem:[%s2626_s7] sm:$0xff]  }
 0x391   : > { %1857 = vmatpush3.bf16.msra.mxu1 %v1982_v15 }
 0x392   : > { %1870 = vmatprep.subr.bf16.mxu1 %v2161_v16 }
 0x393   : > { %v1088_v17 = vpop.f32.mrf.mxu1 }
 0x394   : > { %v1094_v18 = vsel %vm819_vm3, %v1088_v17, -inf }
 0x395   : > { %1095 = vmax.xlane.f32.xlu0 %v1094_v18  ;;  %v1834_v19 = vpop.f32.mrf.mxu1 }
 0x397   : > { %v1091_v20 = vpop.f32.mrf.mxu1 }
 0x399   : > { %v1835_v21 = vpop.f32.mrf.mxu1 }
 0x39b   : > { %v1199_v22 = vpop.f32.mrf.mxu1 }
 0x39c   : > { %v1205_v23 = vsel %vm819_vm3, %v1199_v22, -inf }
 0x39d   : > { %1206 = vmax.xlane.f32.xlu0 %v1205_v23  ;;  %v1846_v24 = vpop.f32.mrf.mxu1 }
 0x39f   : > { %v868_v25 = vpop.xlane.xlu0 %867  ;;  %v1202_v26 = vpop.f32.mrf.mxu1 }
 0x3a0   : > { %v869_v27 = vsub.f32 %v860_v6, %v868_v25 }
 0x3a1   : > { %v1847_v28 = vpop.f32.mrf.mxu1 }
 0x3a2   : > { %v870_v29 = vmul.f32 1.442695, %v869_v27 }
 0x3a4   : > { %1997 = vpow2.f32 %v870_v29 }
 0x3b1   : > { %v1998_v30 = vpop.eup %1997 }
 0x3b2   : > { %v872_v31 = vsel %vm819_vm3, %v1998_v30, 0.0 }
 0x3b3   : > { %873 = vadd.xlane.f32.xlu0 %v872_v31 }
 0x414   : > { %v982_v32 = vpop.xlane.xlu1 %981 }
 0x415   : > { %v983_v33 = vsub.f32 %v974_v11, %v982_v32 }
 0x417   : > { %v984_v34 = vmul.f32 1.442695, %v983_v33 }
 0x419   : > { %1999 = vpow2.f32 %v984_v34 }
 0x41e   : > { %v1096_v35 = vpop.xlane.xlu0 %1095 }
 0x41f   : > { %v1097_v36 = vsub.f32 %v1088_v17, %v1096_v35 }
 0x421   : > { %v1098_v37 = vmul.f32 1.442695, %v1097_v36 }
 0x423   : > { %2001 = vpow2.f32 %v1098_v37  ;;  %v1720_v37 = vld [vmem:[%s2665_s9] ss:$0 sm:$0xff]  ;;  %s1737_s9 = sshll.u32 %s2147_s21, 7  ;;  %s1568_s21 = scalar_lea.sflag [#allocation6], %s2365_s12 }
 0x426   : > { %v2000_v38 = vpop.eup %1999  ;;  %v1207_v43 = vpop.xlane.xlu0 %1206 }
 0x427   : > { %v986_v39 = vsel %vm819_vm3, %v2000_v38, 0.0  ;;  %v1208_v45 = vsub.f32 %v1199_v22, %v1207_v43 }
 0x428   : > { %987 = vadd.xlane.f32.xlu1 %v986_v39 }
 0x429   : > { %v1209_v46 = vmul.f32 1.442695, %v1208_v45 }
 0x430   : > { %v2002_v40 = vpop.eup %2001 }
 0x431   : > { %v1100_v41 = vsel %vm819_vm3, %v2002_v40, 0.0 }
 0x432   : > { %1101 = vadd.xlane.f32.xlu0 %v1100_v41 }
 0x439   : > { %1106 = vrot.lane.b32.xlu1 %v1711_v42, %s2165_s17  ;;  %s2671_s17 = sld [smem:[#allocation24_spill]] }
 0x43c   : > { %v874_v44 = vpop.xlane.xlu0 %873 }
 0x43d   : > { %2003 = vrcp.f32 %v874_v44 }
 0x43e   : > { %2005 = vpow2.f32 %v1209_v46 }
 0x43f   : > { %s2570_s16 = scalar_lea.hbm %s2671_s17, %s1737_s9 }
 0x448   : > { %995 = vrot.lane.b32.xlu0 %v1711_v42, %s2163_s26 }
 0x44a   : > { %v2004_v47 = vpop.eup %2003 }
 0x44b   : > { %v876_v48 = vmul.f32 %v2004_v47, %v1998_v30  ;;  %v2006_v50 = vpop.eup %2005 }
 0x44c   : > { %v1211_v51 = vsel %vm819_vm3, %v2006_v50, 0.0 }
 0x44d   : > { %v877_v49 = vpack.c.bf16 %v876_v48, %v876_v48 }
 0x44f   : > { %1815 = vmatmul.mubr.msk.bf16.vlgmr.msra.gmra.mxu0 %vm819_vm3, %v877_v49  ;;  %v1983_v49 = vld [vmem:[#allocation7 + $0x8] sm:$0xff]  }
 0x450   : > { %1826 = vmatprep.mubr.msk.bf16.mxu0 %vm2162_vm1, %v2161_v16 }
 0x45d   : > { %1212 = vadd.xlane.f32.xlu1 %v1211_v51  ;;  %v1986_v51 = vld [vmem:[%s2666_s25 + $0x30] sm:$0xff]  }
 0x46e   : > { %1217 = vrot.lane.b32.xlu1 %v1711_v42, %s2164_s28 }
 0x4b1   : > { %v988_v52 = vpop.xlane.xlu1 %987 }
 0x4b2   : > { %2007 = vrcp.f32 %v988_v52 }
 0x4b5   : > { %v1107_v58 = vpop.permute.xlu1 %1106 }
 0x4b6   : > { %v1112_v60 = vsel %vm881_vm4, %v1107_v58, 0 }
 0x4bb   : > { %v1102_v53 = vpop.xlane.xlu0 %1101 }
 0x4bc   : > { %2009 = vrcp.f32 %v1102_v53 }
 0x4bf   : > { %v2008_v54 = vpop.eup %2007  ;;  %v996_v55 = vpop.permute.xlu0 %995 }
 0x4c0   : > { %v1001_v56 = vsel %vm881_vm4, %v996_v55, 0  ;;  %v990_v57 = vmul.f32 %v2008_v54, %v2000_v38 }
 0x4c1   : > { %1825 = vmatpush3.bf16.msra.mxu0 %v1001_v56  ;;  %v1721_v56 = vld [vmem:[%s2667_s27] ss:$0 sm:$0xff] }
 0x4c2   : > { %v991_v59 = vpack.c.bf16 %v990_v57, %v990_v57  ;;  %1836 = vmatprep.subr.bf16.mxu0 %v2161_v16 }
 0x4c4   : > { %1827 = vmatmul.mubr.msk.bf16.vlgmr.msra.gmra.mxu0 %vm819_vm3, %v991_v59 }
 0x4c5   : > { %1837 = vmatpush3.bf16.msra.mxu0 %v1112_v60  ;;  %1838 = vmatprep.mubr.msk.bf16.mxu0 %vm2162_vm1, %v2161_v16 }
 0x4c6   : > { %1848 = vmatprep.subr.bf16.mxu0 %v2161_v16 }
 0x4c9   : > { %v2010_v61 = vpop.eup %2009 }
 0x4ca   : > { %v1104_v62 = vmul.f32 %v2010_v61, %v2002_v40 }
 0x4cc   : > { %v1105_v63 = vpack.c.bf16 %v1104_v62, %v1104_v62  ;;  %v1987_v62 = vld [vmem:[%s2666_s25 + $0x28] sm:$0xff]  }
 0x4ce   : > { %1839 = vmatmul.mubr.msk.bf16.vlgmr.msra.gmra.mxu0 %vm819_vm3, %v1105_v63  ;;  %v1988_v63 = vld [vmem:[%s2666_s25 + $0x20] sm:$0xff]  }
 0x4cf   : > { %1850 = vmatprep.mubr.msk.bf16.mxu0 %vm2162_vm1, %v2161_v16 }
 0x4e6   : > { %v1213_v0 = vpop.xlane.xlu1 %1212 }
 0x4e7   : > { %2011 = vrcp.f32 %v1213_v0  ;;  %v1989_v0 = vld [vmem:[%s2666_s25 + $0x18] sm:$0xff]  }
 0x4ea   : > { %v1218_v2 = vpop.permute.xlu1 %1217 }
 0x4eb   : > { %v1223_v3 = vsel %vm881_vm4, %v1218_v2, 0  ;;  %v1990_v2 = vld [vmem:[%s2666_s25 + $0x10] sm:$0xff]  }
 0x4ec   : > { %1849 = vmatpush3.bf16.msra.mxu0 %v1223_v3  ;;  %v1991_v3 = vld [vmem:[%s2666_s25 + $0x8] sm:$0xff]  }
 0x4ed   : > { %1862 = vmatprep.subr.bf16.mxu0 %v2161_v16 }
 0x4f4   : > { %v2012_v4 = vpop.eup %2011 }
 0x4f5   : > { %v1215_v5 = vmul.f32 %v2012_v4, %v2006_v50  ;;  %v1985_v50 = vld [vmem:[%s2666_s25 + $0x38] sm:$0xff]   ;;  %v1992_v4 = vld [vmem:[%s2666_s25] sm:$0xff]  }
 0x4f7   : > { %v1216_v6 = vpack.c.bf16 %v1215_v5, %v1215_v5 }
 0x4f9   : > { %1851 = vmatmul.mubr.msk.bf16.vlgmr.msra.gmra.mxu0 %vm819_vm3, %v1216_v6 }
 0x4fa   : > { %1866 = vmatprep.mubr.msk.bf16.mxu0 %vm2162_vm1, %v2161_v16  ;;  %1863 = vmatpush3.bf16.msra.mxu0 %v1983_v49 }
 0x4fb   : > { %1864 = vmatprep.subr.bf16.mxu0 %v2161_v16 }
 0x50f   : > { %v919_v7 = vpop.f32.mrf.mxu0 }
 0x510   : > { %v925_v30 = vpack.c.bf16 %v919_v7, %v919_v7 }
 0x511   : > { %v1816_v8 = vpop.f32.mrf.mxu0 }
 0x513   : > { %v922_v9 = vpop.f32.mrf.mxu0 }
 0x515   : > { %v1817_v10 = vpop.f32.mrf.mxu0 }
 0x584   : > { %v1037_v11 = vpop.f32.mrf.mxu0 }
 0x585   : > { %v1043_v13 = vpack.c.bf16 %v1037_v11, %v1037_v11 }
 0x586   : > { %v1828_v14 = vpop.f32.mrf.mxu0 }
 0x587   : > { %1267 = vrot.lane.b32.xlu1 %v1043_v13, %s2166_s11  ;;  %s2668_s11 = sld [smem:[#allocation19_spill]] }
 0x588   : > { %v1040_v17 = vpop.f32.mrf.mxu0 }
 0x58a   : > { %v1829_v18 = vpop.f32.mrf.mxu0 }
 0x58b   : > { %v1735_v18 = vld [vmem:[%s2670_s8] ss:$0 sm:$0xff] }
 0x58d   : > { %v1722_v58 = vld [vmem:[%s2668_s11] ss:$0 sm:$0xff]  ;;  %s2669_s11 = sld [smem:[#allocation21_spill]] }
 0x58e   : > { %v1148_v19 = vpop.f32.mrf.mxu0 }
 0x58f   : > { %v1154_v20 = vpack.c.bf16 %v1148_v19, %v1148_v19 }
 0x590   : > { %v1840_v21 = vpop.f32.mrf.mxu0 }
 0x591   : > { %1270 = vrot.lane.b32.xlu0 %v1154_v20, %s2167_s13  ;;  %s1696_s13 = sshll.u32 %s2365_s12, 3 }
 0x592   : > { %v1151_v22 = vpop.f32.mrf.mxu0  ;;  %s559_s22 = scalar_lea.vmem [#allocation9], %s1696_s13 }
 0x593   : > { %v1723_v5 = vld [vmem:[%s2669_s11] ss:$0 sm:$0xff]  ;;  %s1582_s30 = sshll.u32 %s559_s22, 4  ;;  %s2077_s11 = scalar_lea.vmem %s2076_s29, 256  ;;  %s2572_s30 = int_to_ptr.vmem [resolvable:$true] %s1582_s30 }
 0x594   : > { %v1841_v23 = vpop.f32.mrf.mxu0  ;;  %s2071_s27 = scalar_lea.vmem %s2572_s30, 128  ;;  %p2078_p2 = scmp.lt.s32.totalorder %s2572_s30, %s2076_s29 }
 0x595   : > { %p2072_p1 = scmp.ne.s32.totalorder %s2572_s30, %s2071_s27  ;;  %p2079_p3 = scmp.lt.s32.totalorder %s2077_s11, %s2071_s27 }
 0x597   : > { %p2073_p10 = pnand %p2072_p1, %p2337_p13  ;;  %p2080_p5 = por %p2079_p3, %p2078_p2 }
 0x599   : > { %p2074_p0 = pneg %p2073_p10 }
 0x59b   : > { %p2081_p7 = pnand %p2080_p5, %p2074_p0 }
 0x5b9   : > { %v1259_v24 = vpop.f32.mrf.mxu0 }
 0x5ba   : > { %v1265_v25 = vpack.c.bf16 %v1259_v24, %v1259_v24 }
 0x5bb   : > { %v1852_v26 = vpop.f32.mrf.mxu0 }
 0x5bc   : > { %1273 = vrot.lane.b32.xlu1 %v1265_v25, %s2168_s14 }
 0x5bd   : > { %v1262_v27 = vpop.f32.mrf.mxu0 }
 0x5bf   : > { %v1853_v28 = vpop.f32.mrf.mxu0 }
 0x5f9   : > { %v1268_v29 = vpop.permute.xlu1 %1267 }
 0x5fa   : > { %v1277_v32 = vsel %vm819_vm3, %v925_v30, %v1268_v29 }
 0x603   : > { %v1271_v31 = vpop.permute.xlu0 %1270 }
 0x604   : > { %v1280_v33 = vsel %vm1278_vm5, %v1277_v32, %v1271_v31 }
 0x62e   : > { %v1274_v34 = vpop.permute.xlu1 %1273 }
 0x62f   : > { %v1283_v35 = vsel %vm1281_vm6, %v1280_v33, %v1274_v34 }
 0x630   : > { %1859 = vmatmul.mubr.msk.bf16.vlgmr.msra.gmra.mxu1 %vm576_vm0, %v1283_v35 }
 0x631   : > { %1886 = vmatprep.mubr.msk.bf16.mxu1 %vm2162_vm1, %v2161_v16  ;;  %1871 = vmatpush3.bf16.msra.mxu1 %v1985_v50 }
 0x632   : > { %1872 = vmatprep.subr.bf16.mxu1 %v2161_v16 }
 0x635   : > { %1873 = vmatpush3.bf16.msra.mxu1 %v1986_v51 }
 0x636   : > { %1874 = vmatprep.subr.bf16.mxu1 %v2161_v16 }
 0x639   : > { %1875 = vmatpush3.bf16.msra.mxu1 %v1987_v62 }
 0x63a   : > { %1876 = vmatprep.subr.bf16.mxu1 %v2161_v16 }
 0x63d   : > { %1877 = vmatpush3.bf16.msra.mxu1 %v1988_v63 }
 0x63e   : > { %1878 = vmatprep.subr.bf16.mxu1 %v2161_v16 }
 0x641   : > { %1879 = vmatpush3.bf16.msra.mxu1 %v1989_v0 }
 0x642   : > { %1880 = vmatprep.subr.bf16.mxu1 %v2161_v16 }
 0x645   : > { %1881 = vmatpush3.bf16.msra.mxu1 %v1990_v2 }
 0x646   : > { %1882 = vmatprep.subr.bf16.mxu1 %v2161_v16 }
 0x649   : > { %1883 = vmatpush3.bf16.msra.mxu1 %v1991_v3 }
 0x64a   : > { %1884 = vmatprep.subr.bf16.mxu1 %v2161_v16 }
 0x64d   : > { %1885 = vmatpush3.bf16.msra.mxu1 %v1992_v4 }
 0x6f0   : > { %v1336_v36 = vpop.f32.mrf.mxu1 }
 0x6f1   : > { %v1342_v38 = vadd.f32 %v1336_v36, %v2382_v1  ;;  %v1984_v1 = vld [vmem:[#allocation7] sm:$0xff]  }
 0x6f2   : > { %v1860_v39 = vpop.f32.mrf.mxu1  ;;  %1865 = vmatpush3.bf16.msra.mxu0 %v1984_v1 }
 0x6f3   : > { %v2513_v40 = vadd.f32 %v1720_v37, %v1342_v38 }
 0x6f4   : > { %v1339_v41 = vpop.f32.mrf.mxu1 }
 0x6f5   : > { %v1353_v42 = vsel %vm576_vm0, %v2513_v40, 0.0 }
 0x6f6   : > { %1354 = vadd.xlane.f32.xlu0 %v1353_v42  ;;  %v1861_v43 = vpop.f32.mrf.mxu1 }
 0x77f   : > { %v1355_v44 = vpop.xlane.xlu0 %1354 }
 0x780   : > { %v1356_v45 = vmul.f32 0.03125, %v1355_v44 }
 0x782   : > { %v1357_v46 = vsub.f32 %v2513_v40, %v1356_v45 }
 0x784   : > { %v1358_v47 = vmul.f32 %v1357_v46, %v1357_v46 }
 0x786   : > { %v1359_v48 = vsel %vm576_vm0, %v1358_v47, 0.0 }
 0x787   : > { %1360 = vadd.xlane.f32.xlu1 %v1359_v48 }
 0x810   : > { %v1361_v52 = vpop.xlane.xlu1 %1360 }
 0x811   : > { %v1362_v53 = vmul.f32 0.03125, %v1361_v52 }
 0x813   : > { %v1363_v54 = vadd.f32 1e-05, %v1362_v53 }
 0x815   : > { %2013 = vrsqrt.f32 %v1363_v54 }
 0x822   : > { %v2014_v55 = vpop.eup %2013 }
 0x823   : > { %v1365_v57 = vmul.f32 %v2014_v55, %v1357_v46 }
 0x825   : > { %v1372_v59 = vmul.f32 %v1721_v56, %v1365_v57 }
 0x827   : > { %v1379_v60 = vadd.f32 %v1722_v58, %v1372_v59 }
 0x829   : > { %v1380_v61 = vpack.c.bf16 %v1379_v60, %v1379_v60 }
 0x82b   : > { %1867 = vmatmul.mubr.msk.bf16.vlgmr.msra.gmra.mxu0 %vm576_vm0, %v1380_v61 }
 0x8eb   : > { %v1441_v6 = vpop.f32.mrf.mxu0 }
 0x8ec   : > { %v1442_v7 = vadd.f32 %v1723_v5, %v1441_v6 }
 0x8ed   : > { %v1868_v8 = vpop.f32.mrf.mxu0 }
 0x8ee   : > { %v1448_v9 = vmul.f32 0.70710677, %v1442_v7  ;;  %v1447_v16 = vmul.f32 0.5, %v1442_v7 }
 0x8ef   : > { %v1444_v10 = vpop.f32.mrf.mxu0 }
 0x8f0   : > { %2015 = verf.f32 %v1448_v9 }
 0x8f1   : > { %v1869_v11 = vpop.f32.mrf.mxu0 }
 0x8fd   : > { %v2016_v12 = vpop.eup %2015 }
 0x8fe   : > { %v1450_v13 = vadd.f32 1.0, %v2016_v12 }
 0x900   : > { %v1451_v14 = vmul.f32 %v1450_v13, %v1447_v16 }
 0x902   : > { %v1452_v15 = vpack.c.bf16 %v1451_v14, %v1451_v14 }
 0x904   : > { %1887 = vmatmul.mubr.bf16.vlgmr.msra.gmra.mxu1 %v1452_v15 }
 0x9c4   : > { %v1551_v17 = vpop.f32.mrf.mxu1 }
 0x9c5   : > { %v1557_v19 = vadd.f32 %v1551_v17, %v2513_v40 }
 0x9c6   : > { %v1888_v20 = vpop.f32.mrf.mxu1 }
 0x9c7   : > { %v1565_v21 = vadd.f32 %v1735_v18, %v1557_v19 }
 0x9c8   : > { %v1554_v22 = vpop.f32.mrf.mxu1 }
 0x9c9   : > { %1566 = vst.msk [vmem:[%s559_s22] sm:$0xff] %vm576_vm0, %v1565_v21 }
 0x9ca   : > { %v1889_v23 = vpop.f32.mrf.mxu1 }
 0x9cb   : > { %2084 = shalt.err (!%p2081_p7)
}
 0x9cc   : > { %s2085_s13 = scalar_lea.hbm %s2570_s16, 128  ;;  %s2089_s15 = scalar_lea.hbm %s2671_s17, 256 }
 0x9cd   : > { %p2086_p6 = scmp.ne.s32.totalorder %s2570_s16, %s2085_s13  ;;  %p2090_p11 = scmp.lt.s32.totalorder %s2570_s16, %s2671_s17 }
 0x9ce   : > { %p2091_p12 = scmp.lt.s32.totalorder %s2089_s15, %s2085_s13 }
 0x9cf   : > { %p2087_p4 = pnand %p2086_p6, %p2337_p13 }
 0x9d0   : > { %p2092_p8 = por %p2091_p12, %p2090_p11 }
 0x9d1   : > { %p2088_p9 = pneg %p2087_p4 }
 0x9d3   : > { %p2093_p1 = pnand %p2092_p8, %p2088_p9 }
 0x9d5   : > { %2096 = shalt.err (!%p2093_p1)
}
 0x9d6   : > { %1896 = dma.vmem_to_hbm [thread:$0]  (%p2337_p13), %s2572_s30, 128, %s2570_s16, %s1568_s21  }
 0x9d7 PF: > { %s2672_s22 = sld [smem:[#allocation13_spill]]  ;;  %p2675_p0 = scmp.ge.s32.totalorder %s2155_s23, 2 }
 0x9d8   : > { %s2673_s26 = sld [smem:[#allocation15_spill]] }
 0x9dd   : > { %s1594_s28 = sand.u32 1, %s2672_s22  }
 0x9de   : > { %p2674_p10 = scmp.ne.s32.totalorder %s2673_s26, 0  ;;  %s1595_s27 = scalar_lea.sflag [#allocation6], %s1594_s28 }
 0x9e0   : > { %p1907_p2 = pnand %p2675_p0, %p2674_p10 }
 0x9e2   : > { %p1908_p3 = pneg %p1907_p2 }
 0x9e4   : > { %2130 = dma.done.wait (%p1908_p3), %s1595_s27, 128  }
 0x9e5   : > { %2132 = vsyncadd (%p1908_p3), %s1595_s27, 4294967168  ;;  %s32_s23 = sadd.s32 1, %s2155_s23   ;;  %s2676_s10 = smov %s2346_s18 }
 0x9e6   : > { %p29_p5 = scmp.ge.s32.totalorder %s32_s23, 4   ;;  %s2677_s21 = sld [smem:[#allocation14_spill]] }
 0x9e7   : > { %s2678_s22 = sld [smem:[#allocation16_spill]]  ;;  %s2679_s18 = smov %s2139_s19 }
 0x9e8   : > { %s2680_s19 = smov %s2143_s20  ;;  %s2681_s20 = smov %s2676_s10 }
 0x9e9   :  { %31 = sbr.rel (!%p29_p5) target bundleno = 16 (0x10), region = 136 }
 0x9ee   :  { %1600 = vsyncpa [#allocation5], 1 }
 0x9ef   :  { %1602 = vsyncpa [#allocation5 + $0x1], 1 }
 0x9f0   :  { %1603 = vsyncpa [#allocation8], 1 }
 0x9f1   :  { %1604 = vsyncpa [#allocation6], 1 }
 0x9f2   :  { %1606 = vsyncpa [#allocation6 + $0x1], 1 }

</bundles_post_ra>
